<compile_context>
chip_gen: v7x
topology: tpu7x:2x2x1
jax: 0.10.0
libtpu: 0.0.40
codegen_flags: <defaults>
</compile_context>

<pallas_src>
import functools

import jax
import jax.numpy as jnp
from jax.experimental import pallas as pl
from jax.experimental.pallas import tpu as pltpu

_MIB = 1024 * 1024


def _vmem_capacity_bytes():
    try:
        return int(pltpu.get_tpu_info().vmem_capacity_bytes)
    except Exception:
        return 64 * _MIB  # conservative fallback = v7x per-TC VMEM


_VMEM_CAP = _vmem_capacity_bytes()
# Scoped VMEM limit: ~60% of physical, capped; leaves headroom for Mosaic internal scratch.
# (v7x 64 MiB -> ~38 MiB limit; v5e/v6e 128 MiB -> 64 MiB limit.)
_VMEM_LIMIT = int(min(0.6 * _VMEM_CAP, 64 * _MIB))
# Per-kernel block budgets (double-buffered blocks counted by the callers below).
_PW_BLOCK_BUDGET = int(min(_VMEM_CAP // 4, 16 * _MIB))
_SPEC_BLOCK_BUDGET = int(min(_VMEM_CAP // 4, 32 * _MIB))
_ACC_VREG_BUDGET = 96 * 1024  # f32 accumulators must stay well inside the 256 KiB vreg file


# ---------------------------------------------------------------------------
# In-kernel helpers
# ---------------------------------------------------------------------------

def _gelu_f32(x):
    # tanh-approximate GELU (tanh -> EUP slot, essentially free).
    # TODO(synk): reference uses exact erf GELU; difference is tolerance-level.
    c = 0.7978845608028654  # sqrt(2/pi)
    return 0.5 * x * (1.0 + jnp.tanh(c * (x + 0.044715 * x * x * x)))


# ---------------------------------------------------------------------------
# Pallas kernels
# ---------------------------------------------------------------------------

def _linear_kernel(x_ref, w_ref, b_ref, o_ref, *, apply_gelu):
    # x (1, Ci, Tn) bf16, w (Co, Ci) bf16, b (Co, 1) f32 -> o (1, Co, Tn)
    acc = jnp.dot(w_ref[...], x_ref[0], preferred_element_type=jnp.float32)
    acc = acc + b_ref[...]
    if apply_gelu:
        acc = _gelu_f32(acc)
    o_ref[0] = acc.astype(o_ref.dtype)


def _linear_res_kernel(x_ref, w_ref, b_ref, r_ref, o_ref, *, apply_gelu):
    # Fused: 1x1x1 conv matmul + (conv bias + spectral bias) + spectral residual + GELU.
    acc = jnp.dot(w_ref[...], x_ref[0], preferred_element_type=jnp.float32)
    acc = acc + b_ref[...] + r_ref[0].astype(jnp.float32)
    if apply_gelu:
        acc = _gelu_f32(acc)
    o_ref[0] = acc.astype(o_ref.dtype)


def _head_kernel(x_ref, w1_ref, b1_ref, w2_ref, b2_ref, o_ref):
    # Fused fc1 -> GELU -> fc2: the (fc_channels, Tn) intermediate stays in VMEM/vregs.
    h = jnp.dot(w1_ref[...], x_ref[0], preferred_element_type=jnp.float32) + b1_ref[...]
    h = _gelu_f32(h)
    out = jnp.dot(w2_ref[...], h.astype(jnp.bfloat16), preferred_element_type=jnp.float32)
    o_ref[0] = out + b2_ref[...]


def _spectral_contract_kernel(ar_ref, ai_ref, wr_ref, wi_ref, or_ref, oi_ref):
    # Blocks: a (1, B, Ci, Mt) bf16, w (1, Ci, Co, Mt) bf16 -> out (1, B, Co, Mt) f32
    # Accumulate over input channels with a fixed-size (B, Co, Mt) f32 accumulator pair:
    # Mt is chosen by the wrapper so 2*B*Co*Mt*4B stays within the vreg budget (no spill churn).
    _, bsz, ci, mt = ar_ref.shape
    co = wr_ref.shape[2]

    if ci <= 32:
        acc_r = jnp.zeros((bsz, co, mt), jnp.float32)
        acc_i = jnp.zeros((bsz, co, mt), jnp.float32)
        for i in range(ci):                       # static unroll; static ref slices are free views
            ar = ar_ref[0, :, i:i + 1, :].astype(jnp.float32)   # (B, 1, Mt)
            ai = ai_ref[0, :, i:i + 1, :].astype(jnp.float32)
            wr = wr_ref[0, i:i + 1, :, :].astype(jnp.float32)   # (1, Co, Mt)
            wi = wi_ref[0, i:i + 1, :, :].astype(jnp.float32)
            acc_r = acc_r + (ar * wr - ai * wi)
            acc_i = acc_i + (ar * wi + ai * wr)
    else:
        # TODO(synk): large-Ci path uses dynamic sublane slices of the a blocks; bounded live
        # ranges via fori_loop(unroll=4) instead of a full static unroll.
        def body(i, acc):
            acc_r, acc_i = acc
            ar = ar_ref[0, :, pl.ds(i, 1), :].astype(jnp.float32)
            ai = ai_ref[0, :, pl.ds(i, 1), :].astype(jnp.float32)
            wr = wr_ref[0, pl.ds(i, 1), :, :].astype(jnp.float32)
            wi = wi_ref[0, pl.ds(i, 1), :, :].astype(jnp.float32)
            return (acc_r + (ar * wr - ai * wi), acc_i + (ar * wi + ai * wr))

        acc_r, acc_i = jax.lax.fori_loop(
            0, ci, body,
            (jnp.zeros((bsz, co, mt), jnp.float32),
             jnp.zeros((bsz, co, mt), jnp.float32)),
            unroll=4)

    or_ref[0] = acc_r
    oi_ref[0] = acc_i


# ---------------------------------------------------------------------------
# Pallas wrappers
# ---------------------------------------------------------------------------

def _pad_tokens(x, multiple=128):
    """Pad the last (token) axis to a multiple of 128 so stores are lane-dense."""
    n = x.shape[-1]
    n_pad = (-(-n // multiple)) * multiple
    if n_pad == n:
        return x, n
    pad = [(0, 0)] * (x.ndim - 1) + [(0, n_pad - n)]
    return jnp.pad(x, pad), n_pad


def _pick_token_tile(n_pad, bytes_per_token, budget, cap=16384, min_tiles=2):
    """Largest 128-multiple divisor of n_pad within the VMEM budget; prefers >= min_tiles
    grid steps so both v7x TensorCores have work. n_pad must be a multiple of 128."""
    vmem_cap = max(128, (budget // max(bytes_per_token, 1)) // 128 * 128)
    hi = min(cap, vmem_cap, n_pad)
    divs = [t for t in range(128, hi + 1, 128) if n_pad % t == 0]
    if not divs:
        return 128
    pref = [t for t in divs if n_pad // t >= min_tiles]
    return max(pref) if pref else max(divs)


def pointwise_linear(x, w, b, residual=None, apply_gelu=False, out_dtype=jnp.bfloat16):
    """y[b,o,n] = sum_i w[o,i] * x[b,i,n] + b[o] (+ residual[b,o,n]), optional fused GELU.

    x: (B, Ci, N)   w: (Co, Ci)   b: (Co,)   residual: (B, Co, N) or None.
    Token axis N is padded to a 128 multiple (lane-dense); bf16 DMA/MXU, f32 accumulation.
    """
    bsz, ci, n = x.shape
    co = w.shape[0]

    x_p, n_pad = _pad_tokens(x.astype(jnp.bfloat16))
    args = [x_p, w.astype(jnp.bfloat16), b.reshape(co, 1).astype(jnp.float32)]

    # double-buffered bf16 in/out blocks + f32 matmul-epilogue value, per token column
    bytes_per_token = 2 * (2 * ci + 2 * co) + 4 * co

    in_specs = [
        pl.BlockSpec((1, ci, None), lambda bi, ti: (bi, 0, ti)),   # tn filled in below
        pl.BlockSpec((co, ci), lambda bi, ti: (0, 0)),
        pl.BlockSpec((co, 1), lambda bi, ti: (0, 0)),
    ]
    if residual is not None:
        r_p, _ = _pad_tokens(residual.astype(jnp.bfloat16))
        args.append(r_p)
        bytes_per_token += 2 * 2 * co
        kernel = functools.partial(_linear_res_kernel, apply_gelu=apply_gelu)
    else:
        kernel = functools.partial(_linear_kernel, apply_gelu=apply_gelu)

    tn = _pick_token_tile(n_pad, bytes_per_token, _PW_BLOCK_BUDGET)
    grid = (bsz, n_pad // tn)

    in_specs[0] = pl.BlockSpec((1, ci, tn), lambda bi, ti: (bi, 0, ti))
    if residual is not None:
        in_specs.append(pl.BlockSpec((1, co, tn), lambda bi, ti: (bi, 0, ti)))

    y = pl.pallas_call(
        kernel,
        out_shape=jax.ShapeDtypeStruct((bsz, co, n_pad), out_dtype),
        grid=grid,
        in_specs=in_specs,
        out_specs=pl.BlockSpec((1, co, tn), lambda bi, ti: (bi, 0, ti)),
        compiler_params=pltpu.CompilerParams(
            dimension_semantics=("parallel", "parallel"),
            vmem_limit_bytes=_VMEM_LIMIT),
    )(*args)
    return y[..., :n] if n_pad != n else y


def head_pallas(x, w1, b1, w2, b2):
    """Fused fc1 -> GELU -> fc2 head.  x: (B, width, N) -> (B, 1, N) float32."""
    bsz, width, n = x.shape
    fc = w1.shape[0]

    x_p, n_pad = _pad_tokens(x.astype(jnp.bfloat16))
    # double-buffered x/out blocks + fc-wide f32 and bf16 intermediates per token column
    bytes_per_token = 2 * (2 * width + 4 * 1) + 6 * fc
    tn = _pick_token_tile(n_pad, bytes_per_token, _PW_BLOCK_BUDGET)
    grid = (bsz, n_pad // tn)

    out = pl.pallas_call(
        _head_kernel,
        out_shape=jax.ShapeDtypeStruct((bsz, 1, n_pad), jnp.float32),
        grid=grid,
        in_specs=[
            pl.BlockSpec((1, width, tn), lambda bi, ti: (bi, 0, ti)),
            pl.BlockSpec((fc, width), lambda bi, ti: (0, 0)),
            pl.BlockSpec((fc, 1), lambda bi, ti: (0, 0)),
            pl.BlockSpec((1, fc), lambda bi, ti: (0, 0)),
            pl.BlockSpec((1, 1), lambda bi, ti: (0, 0)),
        ],
        out_specs=pl.BlockSpec((1, 1, tn), lambda bi, ti: (bi, 0, ti)),
        compiler_params=pltpu.CompilerParams(
            dimension_semantics=("parallel", "parallel"),
            vmem_limit_bytes=_VMEM_LIMIT),
    )(x_p,
      w1.astype(jnp.bfloat16), b1.reshape(fc, 1).astype(jnp.float32),
      w2.reshape(1, fc).astype(jnp.bfloat16), b2.reshape(1, 1).astype(jnp.float32))
    return out[..., :n] if n_pad != n else out


def spectral_contract_pallas(a_re, a_im, w_re, w_im):
    """Per-mode complex contraction over input channels.

    a_*: (4, B, Ci, Mp) bf16   w_*: (4, Ci, Co, Mp) bf16 -> (4, B, Co, Mp) f32 x 2, Mp % 128 == 0.
    Gridded over (corner, M-tile). Mt sized for BOTH the f32 vreg accumulators and the
    double-buffered VMEM blocks (generation-aware budget).
    """
    nc, bsz, ci, mp = a_re.shape
    co = w_re.shape[2]

    def fits(t):
        acc = 2 * bsz * co * t * 4                                        # vreg accumulators
        vmem = 2 * (2 * bsz * ci * 2 + 2 * ci * co * 2 + 2 * bsz * co * 4) * t  # dbl-buffered blocks
        return acc <= _ACC_VREG_BUDGET and vmem <= _SPEC_BLOCK_BUDGET

    mt = 128
    for t in range((min(mp, 4096) // 128) * 128, 127, -128):
        if mp % t == 0 and fits(t):
            mt = t
            break

    a_spec = pl.BlockSpec((1, bsz, ci, mt), lambda c, m: (c, 0, 0, m))
    w_spec = pl.BlockSpec((1, ci, co, mt), lambda c, m: (c, 0, 0, m))
    o_spec = pl.BlockSpec((1, bsz, co, mt), lambda c, m: (c, 0, 0, m))
    return pl.pallas_call(
        _spectral_contract_kernel,
        out_shape=(jax.ShapeDtypeStruct((nc, bsz, co, mp), jnp.float32),
                   jax.ShapeDtypeStruct((nc, bsz, co, mp), jnp.float32)),
        grid=(nc, mp // mt),
        in_specs=[a_spec, a_spec, w_spec, w_spec],
        out_specs=(o_spec, o_spec),
        compiler_params=pltpu.CompilerParams(
            dimension_semantics=("parallel", "parallel"),
            vmem_limit_bytes=_VMEM_LIMIT),
    )(a_re, a_im, w_re, w_im)


# ---------------------------------------------------------------------------
# Model forward
# ---------------------------------------------------------------------------

def spectral_conv3d(x, wl_re, wl_im, mh, mw, md):
    """FactorizedSpectralConv3d forward (without bias).  x: (B, Ci, H, W, Dp) f32 -> bf16."""
    b, ci, h, w, dp = x.shape
    co = wl_re.shape[2]
    m = mh * mw * md
    m_pad = wl_re.shape[-1]
    assert h == 2 * mh, \
        "reference indexing (corner 2 uses `modes_height:`) requires H == 2*modes_height"

    # TODO(synk): rfftn/irfftn have no Pallas primitive; they stay in XLA (jnp.fft).
    xf = jnp.fft.rfftn(x, axes=(-3, -2, -1), norm="backward")
    df = dp // 2 + 1

    s0 = xf[:, :, :mh, :mw, :md]
    s1 = xf[:, :, -mh:, :mw, :md]
    s2 = xf[:, :, mh:, -mw:, :md]     # faithful to the PyTorch code (not -mh:); overwritten by s3
    s3 = xf[:, :, -mh:, -mw:, :md]
    # TODO(synk): corner gather + the .at[].set scatter below stay in XLA; emitting the corners
    # directly in bf16 at the padded flattened layout halves that side traffic.
    a = jnp.stack([s0, s1, s2, s3], axis=0).reshape(4, b, ci, m)
    pad = ((0, 0), (0, 0), (0, 0), (0, m_pad - m))
    a_re = jnp.pad(jnp.real(a).astype(jnp.bfloat16), pad)
    a_im = jnp.pad(jnp.imag(a).astype(jnp.bfloat16), pad)

    out_re, out_im = spectral_contract_pallas(a_re, a_im, wl_re, wl_im)
    out = (out_re[..., :m] + 1j * out_im[..., :m]).astype(jnp.complex64)
    out = out.reshape(4, b, co, mh, mw, md)

    out_fft = jnp.zeros((b, co, h, w, df), dtype=jnp.complex64)
    out_fft = out_fft.at[:, :, :mh, :mw, :md].set(out[0])
    out_fft = out_fft.at[:, :, -mh:, :mw, :md].set(out[1])
    out_fft = out_fft.at[:, :, mh:, -mw:, :md].set(out[2])
    out_fft = out_fft.at[:, :, -mh:, -mw:, :md].set(out[3])

    y = jnp.fft.irfftn(out_fft, s=(h, w, dp), axes=(-3, -2, -1), norm="backward")
    # bf16 residual: halves the largest input DMA of the fused conv+residual kernel.
    return y.astype(jnp.bfloat16)


def init_params(key, in_channels, width, fc_channels, n_layers, mh, mw, md):
    ks = jax.random.split(key, 11)
    scale = 1.0 / (width * width)
    m = mh * mw * md
    m_pad = ((m + 127) // 128) * 128
    wpad = ((0, 0), (0, 0), (0, 0), (0, 0), (0, m_pad - m))
    # TODO(synk): reference uses tltorch CP-factorized complex weights; a dense-equivalent weight
    # (pre-flattened over modes, zero-padded to a lane-dense 128 multiple, stored bf16) is used.
    spec_re = scale * jax.random.normal(ks[8], (n_layers, 4, width, width, m), jnp.float32)
    spec_im = scale * jax.random.normal(ks[9], (n_layers, 4, width, width, m), jnp.float32)
    p = {
        # linear weights stored as (out, in) so  W @ X_tokens
        "fc0_w": 0.1 * jax.random.normal(ks[0], (width, in_channels), jnp.float32),
        "fc0_b": 0.1 * jax.random.normal(ks[1], (width,), jnp.float32),
        "fc1_w": 0.1 * jax.random.normal(ks[2], (fc_channels, width), jnp.float32),
        "fc1_b": 0.1 * jax.random.normal(ks[3], (fc_channels,), jnp.float32),
        "fc2_w": 0.1 * jax.random.normal(ks[4], (1, fc_channels), jnp.float32),
        "fc2_b": 0.1 * jax.random.normal(ks[5], (1,), jnp.float32),
        # 1x1x1 Conv3d per layer, (layer, out, in) + (layer, out)
        "conv1x1_w": 0.1 * jax.random.normal(ks[6], (n_layers, width, width), jnp.float32),
        "conv1x1_b": 0.1 * jax.random.normal(ks[7], (n_layers, width), jnp.float32),
        # dense-equivalent spectral weights: (layer, corner, Ci, Co, M_pad), bf16 for HBM bandwidth
        "spec_w_re": jnp.pad(spec_re, wpad).astype(jnp.bfloat16),
        "spec_w_im": jnp.pad(spec_im, wpad).astype(jnp.bfloat16),
        "spec_b": scale * jax.random.normal(ks[10], (width,), jnp.float32),
    }
    return p


def factorized_fno3d_forward(params, x, *, mh, mw, md, domain_padding, n_layers):
    """x: (B, in_channels, H, W, D) float32 -> (B, 1, H, W, D) float32."""
    b, cin, h, w, d = x.shape
    width = params["fc0_w"].shape[0]
    n0 = h * w * d

    # fc0: pointwise over channels, channel-first, no transposes anywhere.
    y = pointwise_linear(x.reshape(b, cin, n0), params["fc0_w"], params["fc0_b"])
    y = y.reshape(b, width, h, w, d)                                 # (B, width, H, W, D) bf16

    # F.pad(x, [0, domain_padding]) pads the last (depth) dim on the right
    y = jnp.pad(y, ((0, 0), (0, 0), (0, 0), (0, 0), (0, domain_padding)))
    dp = d + domain_padding
    n = h * w * dp

    for i in range(n_layers):
        x1 = spectral_conv3d(y.astype(jnp.float32),
                             params["spec_w_re"][i], params["spec_w_im"][i], mh, mw, md)
        # fuse: 1x1x1 conv matmul + conv bias + spectral-conv bias + spectral residual
        # (+ GELU for all but the last layer) in ONE Pallas kernel.
        bias_i = params["conv1x1_b"][i] + params["spec_b"]
        z = pointwise_linear(y.reshape(b, width, n), params["conv1x1_w"][i], bias_i,
                             residual=x1.reshape(b, width, n),
                             apply_gelu=(i < n_layers - 1))
        y = z.reshape(b, width, h, w, dp)

    y = y[..., :d]                                                   # safe when domain_padding == 0
    out = head_pallas(y.reshape(b, width, n0),
                      params["fc1_w"], params["fc1_b"],
                      params["fc2_w"], params["fc2_b"])              # (B, 1, N) f32
    return out.reshape(b, 1, h, w, d)


# ---------------------------------------------------------------------------
# Demo
# ---------------------------------------------------------------------------

if __name__ == "__main__":
    # small config consistent with FactorizedFNO3d defaults
    B, IN_CH, H, W, D = 2, 3, 8, 8, 8
    MODES_H = MODES_W = MODES_D = 4          # H == 2*modes_height (required by reference indexing)
    WIDTH = 8
    FC_CHANNELS = 32
    N_LAYERS = 2
    DOMAIN_PADDING = 9

    key = jax.random.PRNGKey(0)
    k_x, k_p = jax.random.split(key)
    x = jax.random.normal(k_x, (B, IN_CH, H, W, D), jnp.float32)
    params = init_params(k_p, IN_CH, WIDTH, FC_CHANNELS, N_LAYERS, MODES_H, MODES_W, MODES_D)

    fwd = jax.jit(functools.partial(
        factorized_fno3d_forward,
        mh=MODES_H, mw=MODES_W, md=MODES_D,
        domain_padding=DOMAIN_PADDING, n_layers=N_LAYERS))

    out = jax.block_until_ready(fwd(params, x))
    assert out.shape == (B, 1, H, W, D), out.shape
    assert bool(jnp.all(jnp.isfinite(out))), "non-finite output"
    print("KERNEL_OK")
</pallas_src>

<mosaic_0001>
module attributes {stable_mosaic.version = 11 : i64} {
  func.func @_linear_kernel(%arg0: i32, %arg1: i32, %arg2: memref<1x3x256xbf16, #tpu.memory_space<vmem>>, %arg3: memref<8x3xbf16, #tpu.memory_space<vmem>>, %arg4: memref<8x1xf32, #tpu.memory_space<vmem>>, %arg5: memref<1x8x256xbf16, #tpu.memory_space<vmem>>) attributes {dimension_semantics = [#tpu.dimension_semantics<parallel>, #tpu.dimension_semantics<parallel>], iteration_bounds = array<i64: 2, 2>, scalar_prefetch = 0 : i64, scratch_operands = 0 : i64, tpu.core_type = #tpu.core_type<tc>, window_params = [{transform_indices = @transform_0, window_bounds = array<i64: 1, 3, 256>}, {pipeline_mode = #tpu.pipeline_mode<synchronous>, transform_indices = @transform_1, window_bounds = array<i64: 8, 3>}, {pipeline_mode = #tpu.pipeline_mode<synchronous>, transform_indices = @transform_2, window_bounds = array<i64: 8, 1>}, {transform_indices = @transform_3, window_bounds = array<i64: 1, 8, 256>}]} {
    %c0 = arith.constant 0 : index
    %c0_0 = arith.constant 0 : index
    %0 = vector.load %arg3[%c0, %c0_0] : memref<8x3xbf16, #tpu.memory_space<vmem>>, vector<8x3xbf16>
    %c0_1 = arith.constant 0 : index
    %c0_2 = arith.constant 0 : index
    %c0_3 = arith.constant 0 : index
    %1 = vector.load %arg2[%c0_1, %c0_2, %c0_3] : memref<1x3x256xbf16, #tpu.memory_space<vmem>>, vector<1x3x256xbf16>
    %2 = vector.shape_cast %1 : vector<1x3x256xbf16> to vector<3x256xbf16>
    %cst = arith.constant dense<0.000000e+00> : vector<8x256xf32>
    %3 = tpu.matmul %0, %2, %cst {dimension_numbers = #tpu.dot_dimension_numbers<[1], [0], [0], [1], [0, 0, 1, 1], [], []>} : vector<8x3xbf16>, vector<3x256xbf16>, vector<8x256xf32> -> vector<8x256xf32>
    %c0_4 = arith.constant 0 : index
    %c0_5 = arith.constant 0 : index
    %4 = vector.load %arg4[%c0_4, %c0_5] : memref<8x1xf32, #tpu.memory_space<vmem>>, vector<8x1xf32>
    %5 = vector.broadcast %4 : vector<8x1xf32> to vector<8x256xf32>
    %6 = arith.addf %3, %5 : vector<8x256xf32>
    %7 = arith.truncf %6 : vector<8x256xf32> to vector<8x256xbf16>
    %c0_6 = arith.constant 0 : index
    %c0_7 = arith.constant 0 : index
    %c0_8 = arith.constant 0 : index
    %8 = vector.load %arg5[%c0_6, %c0_7, %c0_8] : memref<1x8x256xbf16, #tpu.memory_space<vmem>>, vector<1x8x256xbf16>
    %9 = vector.shape_cast %8 : vector<1x8x256xbf16> to vector<8x256xbf16>
    %10 = vector.shape_cast %7 : vector<8x256xbf16> to vector<1x8x256xbf16>
    tpu.vector_store %arg5[%c0_6, %c0_7, %c0_8], %10 {strides = array<i32>} : memref<1x8x256xbf16, #tpu.memory_space<vmem>>, vector<1x8x256xbf16>,
    return
  }
  func.func @transform_0(%arg0: i32, %arg1: i32) -> (i32, i32, i32) {
    %c0_i32 = arith.constant 0 : i32
    %c0_i32_0 = arith.constant 0 : i32
    return %arg0, %c0_i32, %arg1 : i32, i32, i32
  }
  func.func @transform_1(%arg0: i32, %arg1: i32) -> (i32, i32) {
    %c0_i32 = arith.constant 0 : i32
    %c0_i32_0 = arith.constant 0 : i32
    %c0_i32_1 = arith.constant 0 : i32
    return %c0_i32, %c0_i32_0 : i32, i32
  }
  func.func @transform_2(%arg0: i32, %arg1: i32) -> (i32, i32) {
    %c0_i32 = arith.constant 0 : i32
    %c0_i32_0 = arith.constant 0 : i32
    %c0_i32_1 = arith.constant 0 : i32
    return %c0_i32, %c0_i32_0 : i32, i32
  }
  func.func @transform_3(%arg0: i32, %arg1: i32) -> (i32, i32, i32) {
    %c0_i32 = arith.constant 0 : i32
    %c0_i32_0 = arith.constant 0 : i32
    return %arg0, %c0_i32, %arg1 : i32, i32, i32
  }
}

module attributes {stable_mosaic.version = 11 : i64} {
  func.func @_spectral_contract_kernel(%arg0: i32, %arg1: i32, %arg2: memref<1x2x8x128xbf16, #tpu.memory_space<vmem>>, %arg3: memref<1x2x8x128xbf16, #tpu.memory_space<vmem>>, %arg4: memref<1x8x8x128xbf16, #tpu.memory_space<vmem>>, %arg5: memref<1x8x8x128xbf16, #tpu.memory_space<vmem>>, %arg6: memref<1x2x8x128xf32, #tpu.memory_space<vmem>>, %arg7: memref<1x2x8x128xf32, #tpu.memory_space<vmem>>) attributes {dimension_semantics = [#tpu.dimension_semantics<parallel>, #tpu.dimension_semantics<parallel>], iteration_bounds = array<i64: 4, 1>, scalar_prefetch = 0 : i64, scratch_operands = 0 : i64, tpu.core_type = #tpu.core_type<tc>, window_params = [{transform_indices = @transform_0, window_bounds = array<i64: 1, 2, 8, 128>}, {transform_indices = @transform_1, window_bounds = array<i64: 1, 2, 8, 128>}, {transform_indices = @transform_2, window_bounds = array<i64: 1, 8, 8, 128>}, {transform_indices = @transform_3, window_bounds = array<i64: 1, 8, 8, 128>}, {transform_indices = @transform_4, window_bounds = array<i64: 1, 2, 8, 128>}, {transform_indices = @transform_5, window_bounds = array<i64: 1, 2, 8, 128>}]} {
    %cst = arith.constant 0.000000e+00 : f32
    %0 = vector.broadcast %cst : f32 to vector<2x8x128xf32>
    %cst_0 = arith.constant 0.000000e+00 : f32
    %1 = vector.broadcast %cst_0 : f32 to vector<2x8x128xf32>
    %c0 = arith.constant 0 : index
    %c0_1 = arith.constant 0 : index
    %c0_2 = arith.constant 0 : index
    %c0_3 = arith.constant 0 : index
    %2 = vector.load %arg2[%c0, %c0_1, %c0_2, %c0_3] : memref<1x2x8x128xbf16, #tpu.memory_space<vmem>>, vector<1x2x1x128xbf16>
    %3 = vector.shape_cast %2 : vector<1x2x1x128xbf16> to vector<2x1x128xbf16>
    %4 = arith.extf %3 : vector<2x1x128xbf16> to vector<2x1x128xf32>
    %c0_4 = arith.constant 0 : index
    %c0_5 = arith.constant 0 : index
    %c0_6 = arith.constant 0 : index
    %c0_7 = arith.constant 0 : index
    %5 = vector.load %arg3[%c0_4, %c0_5, %c0_6, %c0_7] : memref<1x2x8x128xbf16, #tpu.memory_space<vmem>>, vector<1x2x1x128xbf16>
    %6 = vector.shape_cast %5 : vector<1x2x1x128xbf16> to vector<2x1x128xbf16>
    %7 = arith.extf %6 : vector<2x1x128xbf16> to vector<2x1x128xf32>
    %c0_8 = arith.constant 0 : index
    %c0_9 = arith.constant 0 : index
    %c0_10 = arith.constant 0 : index
    %c0_11 = arith.constant 0 : index
    %8 = vector.load %arg4[%c0_8, %c0_9, %c0_10, %c0_11] : memref<1x8x8x128xbf16, #tpu.memory_space<vmem>>, vector<1x1x8x128xbf16>
    %9 = vector.shape_cast %8 : vector<1x1x8x128xbf16> to vector<1x8x128xbf16>
    %10 = arith.extf %9 : vector<1x8x128xbf16> to vector<1x8x128xf32>
    %c0_12 = arith.constant 0 : index
    %c0_13 = arith.constant 0 : index
    %c0_14 = arith.constant 0 : index
    %c0_15 = arith.constant 0 : index
    %11 = vector.load %arg5[%c0_12, %c0_13, %c0_14, %c0_15] : memref<1x8x8x128xbf16, #tpu.memory_space<vmem>>, vector<1x1x8x128xbf16>
    %12 = vector.shape_cast %11 : vector<1x1x8x128xbf16> to vector<1x8x128xbf16>
    %13 = arith.extf %12 : vector<1x8x128xbf16> to vector<1x8x128xf32>
    %14 = vector.broadcast %4 : vector<2x1x128xf32> to vector<2x8x128xf32>
    %15 = vector.broadcast %10 : vector<1x8x128xf32> to vector<2x8x128xf32>
    %16 = arith.mulf %14, %15 : vector<2x8x128xf32>
    %17 = vector.broadcast %7 : vector<2x1x128xf32> to vector<2x8x128xf32>
    %18 = vector.broadcast %13 : vector<1x8x128xf32> to vector<2x8x128xf32>
    %19 = arith.mulf %17, %18 : vector<2x8x128xf32>
    %20 = arith.subf %16, %19 : vector<2x8x128xf32>
    %21 = arith.addf %0, %20 : vector<2x8x128xf32>
    %22 = vector.broadcast %4 : vector<2x1x128xf32> to vector<2x8x128xf32>
    %23 = vector.broadcast %13 : vector<1x8x128xf32> to vector<2x8x128xf32>
    %24 = arith.mulf %22, %23 : vector<2x8x128xf32>
    %25 = vector.broadcast %7 : vector<2x1x128xf32> to vector<2x8x128xf32>
    %26 = vector.broadcast %10 : vector<1x8x128xf32> to vector<2x8x128xf32>
    %27 = arith.mulf %25, %26 : vector<2x8x128xf32>
    %28 = arith.addf %24, %27 : vector<2x8x128xf32>
    %29 = arith.addf %1, %28 : vector<2x8x128xf32>
    %c0_16 = arith.constant 0 : index
    %c0_17 = arith.constant 0 : index
    %c1 = arith.constant 1 : index
    %c0_18 = arith.constant 0 : index
    %30 = vector.load %arg2[%c0_16, %c0_17, %c1, %c0_18] : memref<1x2x8x128xbf16, #tpu.memory_space<vmem>>, vector<1x2x1x128xbf16>
    %31 = vector.shape_cast %30 : vector<1x2x1x128xbf16> to vector<2x1x128xbf16>
    %32 = arith.extf %31 : vector<2x1x128xbf16> to vector<2x1x128xf32>
    %c0_19 = arith.constant 0 : index
    %c0_20 = arith.constant 0 : index
    %c1_21 = arith.constant 1 : index
    %c0_22 = arith.constant 0 : index
    %33 = vector.load %arg3[%c0_19, %c0_20, %c1_21, %c0_22] : memref<1x2x8x128xbf16, #tpu.memory_space<vmem>>, vector<1x2x1x128xbf16>
    %34 = vector.shape_cast %33 : vector<1x2x1x128xbf16> to vector<2x1x128xbf16>
    %35 = arith.extf %34 : vector<2x1x128xbf16> to vector<2x1x128xf32>
    %c0_23 = arith.constant 0 : index
    %c1_24 = arith.constant 1 : index
    %c0_25 = arith.constant 0 : index
    %c0_26 = arith.constant 0 : index
    %36 = vector.load %arg4[%c0_23, %c1_24, %c0_25, %c0_26] : memref<1x8x8x128xbf16, #tpu.memory_space<vmem>>, vector<1x1x8x128xbf16>
    %37 = vector.shape_cast %36 : vector<1x1x8x128xbf16> to vector<1x8x128xbf16>
    %38 = arith.extf %37 : vector<1x8x128xbf16> to vector<1x8x128xf32>
    %c0_27 = arith.constant 0 : index
    %c1_28 = arith.constant 1 : index
    %c0_29 = arith.constant 0 : index
    %c0_30 = arith.constant 0 : index
    %39 = vector.load %arg5[%c0_27, %c1_28, %c0_29, %c0_30] : memref<1x8x8x128xbf16, #tpu.memory_space<vmem>>, vector<1x1x8x128xbf16>
    %40 = vector.shape_cast %39 : vector<1x1x8x128xbf16> to vector<1x8x128xbf16>
    %41 = arith.extf %40 : vector<1x8x128xbf16> to vector<1x8x128xf32>
    %42 = vector.broadcast %32 : vector<2x1x128xf32> to vector<2x8x128xf32>
    %43 = vector.broadcast %38 : vector<1x8x128xf32> to vector<2x8x128xf32>
    %44 = arith.mulf %42, %43 : vector<2x8x128xf32>
    %45 = vector.broadcast %35 : vector<2x1x128xf32> to vector<2x8x128xf32>
    %46 = vector.broadcast %41 : vector<1x8x128xf32> to vector<2x8x128xf32>
    %47 = arith.mulf %45, %46 : vector<2x8x128xf32>
    %48 = arith.subf %44, %47 : vector<2x8x128xf32>
    %49 = arith.addf %21, %48 : vector<2x8x128xf32>
    %50 = vector.broadcast %32 : vector<2x1x128xf32> to vector<2x8x128xf32>
    %51 = vector.broadcast %41 : vector<1x8x128xf32> to vector<2x8x128xf32>
    %52 = arith.mulf %50, %51 : vector<2x8x128xf32>
    %53 = vector.broadcast %35 : vector<2x1x128xf32> to vector<2x8x128xf32>
    %54 = vector.broadcast %38 : vector<1x8x128xf32> to vector<2x8x128xf32>
    %55 = arith.mulf %53, %54 : vector<2x8x128xf32>
    %56 = arith.addf %52, %55 : vector<2x8x128xf32>
    %57 = arith.addf %29, %56 : vector<2x8x128xf32>
    %c0_31 = arith.constant 0 : index
    %c0_32 = arith.constant 0 : index
    %c2 = arith.constant 2 : index
    %c0_33 = arith.constant 0 : index
    %58 = vector.load %arg2[%c0_31, %c0_32, %c2, %c0_33] : memref<1x2x8x128xbf16, #tpu.memory_space<vmem>>, vector<1x2x1x128xbf16>
    %59 = vector.shape_cast %58 : vector<1x2x1x128xbf16> to vector<2x1x128xbf16>
    %60 = arith.extf %59 : vector<2x1x128xbf16> to vector<2x1x128xf32>
    %c0_34 = arith.constant 0 : index
    %c0_35 = arith.constant 0 : index
    %c2_36 = arith.constant 2 : index
    %c0_37 = arith.constant 0 : index
    %61 = vector.load %arg3[%c0_34, %c0_35, %c2_36, %c0_37] : memref<1x2x8x128xbf16, #tpu.memory_space<vmem>>, vector<1x2x1x128xbf16>
    %62 = vector.shape_cast %61 : vector<1x2x1x128xbf16> to vector<2x1x128xbf16>
    %63 = arith.extf %62 : vector<2x1x128xbf16> to vector<2x1x128xf32>
    %c0_38 = arith.constant 0 : index
    %c2_39 = arith.constant 2 : index
    %c0_40 = arith.constant 0 : index
    %c0_41 = arith.constant 0 : index
    %64 = vector.load %arg4[%c0_38, %c2_39, %c0_40, %c0_41] : memref<1x8x8x128xbf16, #tpu.memory_space<vmem>>, vector<1x1x8x128xbf16>
    %65 = vector.shape_cast %64 : vector<1x1x8x128xbf16> to vector<1x8x128xbf16>
    %66 = arith.extf %65 : vector<1x8x128xbf16> to vector<1x8x128xf32>
    %c0_42 = arith.constant 0 : index
    %c2_43 = arith.constant 2 : index
    %c0_44 = arith.constant 0 : index
    %c0_45 = arith.constant 0 : index
    %67 = vector.load %arg5[%c0_42, %c2_43, %c0_44, %c0_45] : memref<1x8x8x128xbf16, #tpu.memory_space<vmem>>, vector<1x1x8x128xbf16>
    %68 = vector.shape_cast %67 : vector<1x1x8x128xbf16> to vector<1x8x128xbf16>
    %69 = arith.extf %68 : vector<1x8x128xbf16> to vector<1x8x128xf32>
    %70 = vector.broadcast %60 : vector<2x1x128xf32> to vector<2x8x128xf32>
    %71 = vector.broadcast %66 : vector<1x8x128xf32> to vector<2x8x128xf32>
    %72 = arith.mulf %70, %71 : vector<2x8x128xf32>
    %73 = vector.broadcast %63 : vector<2x1x128xf32> to vector<2x8x128xf32>
    %74 = vector.broadcast %69 : vector<1x8x128xf32> to vector<2x8x128xf32>
    %75 = arith.mulf %73, %74 : vector<2x8x128xf32>
    %76 = arith.subf %72, %75 : vector<2x8x128xf32>
    %77 = arith.addf %49, %76 : vector<2x8x128xf32>
    %78 = vector.broadcast %60 : vector<2x1x128xf32> to vector<2x8x128xf32>
    %79 = vector.broadcast %69 : vector<1x8x128xf32> to vector<2x8x128xf32>
    %80 = arith.mulf %78, %79 : vector<2x8x128xf32>
    %81 = vector.broadcast %63 : vector<2x1x128xf32> to vector<2x8x128xf32>
    %82 = vector.broadcast %66 : vector<1x8x128xf32> to vector<2x8x128xf32>
    %83 = arith.mulf %81, %82 : vector<2x8x128xf32>
    %84 = arith.addf %80, %83 : vector<2x8x128xf32>
    %85 = arith.addf %57, %84 : vector<2x8x128xf32>
    %c0_46 = arith.constant 0 : index
    %c0_47 = arith.constant 0 : index
    %c3 = arith.constant 3 : index
    %c0_48 = arith.constant 0 : index
    %86 = vector.load %arg2[%c0_46, %c0_47, %c3, %c0_48] : memref<1x2x8x128xbf16, #tpu.memory_space<vmem>>, vector<1x2x1x128xbf16>
    %87 = vector.shape_cast %86 : vector<1x2x1x128xbf16> to vector<2x1x128xbf16>
    %88 = arith.extf %87 : vector<2x1x128xbf16> to vector<2x1x128xf32>
    %c0_49 = arith.constant 0 : index
    %c0_50 = arith.constant 0 : index
    %c3_51 = arith.constant 3 : index
    %c0_52 = arith.constant 0 : index
    %89 = vector.load %arg3[%c0_49, %c0_50, %c3_51, %c0_52] : memref<1x2x8x128xbf16, #tpu.memory_space<vmem>>, vector<1x2x1x128xbf16>
    %90 = vector.shape_cast %89 : vector<1x2x1x128xbf16> to vector<2x1x128xbf16>
    %91 = arith.extf %90 : vector<2x1x128xbf16> to vector<2x1x128xf32>
    %c0_53 = arith.constant 0 : index
    %c3_54 = arith.constant 3 : index
    %c0_55 = arith.constant 0 : index
    %c0_56 = arith.constant 0 : index
    %92 = vector.load %arg4[%c0_53, %c3_54, %c0_55, %c0_56] : memref<1x8x8x128xbf16, #tpu.memory_space<vmem>>, vector<1x1x8x128xbf16>
    %93 = vector.shape_cast %92 : vector<1x1x8x128xbf16> to vector<1x8x128xbf16>
    %94 = arith.extf %93 : vector<1x8x128xbf16> to vector<1x8x128xf32>
    %c0_57 = arith.constant 0 : index
    %c3_58 = arith.constant 3 : index
    %c0_59 = arith.constant 0 : index
    %c0_60 = arith.constant 0 : index
    %95 = vector.load %arg5[%c0_57, %c3_58, %c0_59, %c0_60] : memref<1x8x8x128xbf16, #tpu.memory_space<vmem>>, vector<1x1x8x128xbf16>
    %96 = vector.shape_cast %95 : vector<1x1x8x128xbf16> to vector<1x8x128xbf16>
    %97 = arith.extf %96 : vector<1x8x128xbf16> to vector<1x8x128xf32>
    %98 = vector.broadcast %88 : vector<2x1x128xf32> to vector<2x8x128xf32>
    %99 = vector.broadcast %94 : vector<1x8x128xf32> to vector<2x8x128xf32>
    %100 = arith.mulf %98, %99 : vector<2x8x128xf32>
    %101 = vector.broadcast %91 : vector<2x1x128xf32> to vector<2x8x128xf32>
    %102 = vector.broadcast %97 : vector<1x8x128xf32> to vector<2x8x128xf32>
    %103 = arith.mulf %101, %102 : vector<2x8x128xf32>
    %104 = arith.subf %100, %103 : vector<2x8x128xf32>
    %105 = arith.addf %77, %104 : vector<2x8x128xf32>
    %106 = vector.broadcast %88 : vector<2x1x128xf32> to vector<2x8x128xf32>
    %107 = vector.broadcast %97 : vector<1x8x128xf32> to vector<2x8x128xf32>
    %108 = arith.mulf %106, %107 : vector<2x8x128xf32>
    %109 = vector.broadcast %91 : vector<2x1x128xf32> to vector<2x8x128xf32>
    %110 = vector.broadcast %94 : vector<1x8x128xf32> to vector<2x8x128xf32>
    %111 = arith.mulf %109, %110 : vector<2x8x128xf32>
    %112 = arith.addf %108, %111 : vector<2x8x128xf32>
    %113 = arith.addf %85, %112 : vector<2x8x128xf32>
    %c0_61 = arith.constant 0 : index
    %c0_62 = arith.constant 0 : index
    %c4 = arith.constant 4 : index
    %c0_63 = arith.constant 0 : index
    %114 = vector.load %arg2[%c0_61, %c0_62, %c4, %c0_63] : memref<1x2x8x128xbf16, #tpu.memory_space<vmem>>, vector<1x2x1x128xbf16>
    %115 = vector.shape_cast %114 : vector<1x2x1x128xbf16> to vector<2x1x128xbf16>
    %116 = arith.extf %115 : vector<2x1x128xbf16> to vector<2x1x128xf32>
    %c0_64 = arith.constant 0 : index
    %c0_65 = arith.constant 0 : index
    %c4_66 = arith.constant 4 : index
    %c0_67 = arith.constant 0 : index
    %117 = vector.load %arg3[%c0_64, %c0_65, %c4_66, %c0_67] : memref<1x2x8x128xbf16, #tpu.memory_space<vmem>>, vector<1x2x1x128xbf16>
    %118 = vector.shape_cast %117 : vector<1x2x1x128xbf16> to vector<2x1x128xbf16>
    %119 = arith.extf %118 : vector<2x1x128xbf16> to vector<2x1x128xf32>
    %c0_68 = arith.constant 0 : index
    %c4_69 = arith.constant 4 : index
    %c0_70 = arith.constant 0 : index
    %c0_71 = arith.constant 0 : index
    %120 = vector.load %arg4[%c0_68, %c4_69, %c0_70, %c0_71] : memref<1x8x8x128xbf16, #tpu.memory_space<vmem>>, vector<1x1x8x128xbf16>
    %121 = vector.shape_cast %120 : vector<1x1x8x128xbf16> to vector<1x8x128xbf16>
    %122 = arith.extf %121 : vector<1x8x128xbf16> to vector<1x8x128xf32>
    %c0_72 = arith.constant 0 : index
    %c4_73 = arith.constant 4 : index
    %c0_74 = arith.constant 0 : index
    %c0_75 = arith.constant 0 : index
    %123 = vector.load %arg5[%c0_72, %c4_73, %c0_74, %c0_75] : memref<1x8x8x128xbf16, #tpu.memory_space<vmem>>, vector<1x1x8x128xbf16>
    %124 = vector.shape_cast %123 : vector<1x1x8x128xbf16> to vector<1x8x128xbf16>
    %125 = arith.extf %124 : vector<1x8x128xbf16> to vector<1x8x128xf32>
    %126 = vector.broadcast %116 : vector<2x1x128xf32> to vector<2x8x128xf32>
    %127 = vector.broadcast %122 : vector<1x8x128xf32> to vector<2x8x128xf32>
    %128 = arith.mulf %126, %127 : vector<2x8x128xf32>
    %129 = vector.broadcast %119 : vector<2x1x128xf32> to vector<2x8x128xf32>
    %130 = vector.broadcast %125 : vector<1x8x128xf32> to vector<2x8x128xf32>
    %131 = arith.mulf %129, %130 : vector<2x8x128xf32>
    %132 = arith.subf %128, %131 : vector<2x8x128xf32>
    %133 = arith.addf %105, %132 : vector<2x8x128xf32>
    %134 = vector.broadcast %116 : vector<2x1x128xf32> to vector<2x8x128xf32>
    %135 = vector.broadcast %125 : vector<1x8x128xf32> to vector<2x8x128xf32>
    %136 = arith.mulf %134, %135 : vector<2x8x128xf32>
    %137 = vector.broadcast %119 : vector<2x1x128xf32> to vector<2x8x128xf32>
    %138 = vector.broadcast %122 : vector<1x8x128xf32> to vector<2x8x128xf32>
    %139 = arith.mulf %137, %138 : vector<2x8x128xf32>
    %140 = arith.addf %136, %139 : vector<2x8x128xf32>
    %141 = arith.addf %113, %140 : vector<2x8x128xf32>
    %c0_76 = arith.constant 0 : index
    %c0_77 = arith.constant 0 : index
    %c5 = arith.constant 5 : index
    %c0_78 = arith.constant 0 : index
    %142 = vector.load %arg2[%c0_76, %c0_77, %c5, %c0_78] : memref<1x2x8x128xbf16, #tpu.memory_space<vmem>>, vector<1x2x1x128xbf16>
    %143 = vector.shape_cast %142 : vector<1x2x1x128xbf16> to vector<2x1x128xbf16>
    %144 = arith.extf %143 : vector<2x1x128xbf16> to vector<2x1x128xf32>
    %c0_79 = arith.constant 0 : index
    %c0_80 = arith.constant 0 : index
    %c5_81 = arith.constant 5 : index
    %c0_82 = arith.constant 0 : index
    %145 = vector.load %arg3[%c0_79, %c0_80, %c5_81, %c0_82] : memref<1x2x8x128xbf16, #tpu.memory_space<vmem>>, vector<1x2x1x128xbf16>
    %146 = vector.shape_cast %145 : vector<1x2x1x128xbf16> to vector<2x1x128xbf16>
    %147 = arith.extf %146 : vector<2x1x128xbf16> to vector<2x1x128xf32>
    %c0_83 = arith.constant 0 : index
    %c5_84 = arith.constant 5 : index
    %c0_85 = arith.constant 0 : index
    %c0_86 = arith.constant 0 : index
    %148 = vector.load %arg4[%c0_83, %c5_84, %c0_85, %c0_86] : memref<1x8x8x128xbf16, #tpu.memory_space<vmem>>, vector<1x1x8x128xbf16>
    %149 = vector.shape_cast %148 : vector<1x1x8x128xbf16> to vector<1x8x128xbf16>
    %150 = arith.extf %149 : vector<1x8x128xbf16> to vector<1x8x128xf32>
    %c0_87 = arith.constant 0 : index
    %c5_88 = arith.constant 5 : index
    %c0_89 = arith.constant 0 : index
    %c0_90 = arith.constant 0 : index
    %151 = vector.load %arg5[%c0_87, %c5_88, %c0_89, %c0_90] : memref<1x8x8x128xbf16, #tpu.memory_space<vmem>>, vector<1x1x8x128xbf16>
    %152 = vector.shape_cast %151 : vector<1x1x8x128xbf16> to vector<1x8x128xbf16>
    %153 = arith.extf %152 : vector<1x8x128xbf16> to vector<1x8x128xf32>
    %154 = vector.broadcast %144 : vector<2x1x128xf32> to vector<2x8x128xf32>
    %155 = vector.broadcast %150 : vector<1x8x128xf32> to vector<2x8x128xf32>
    %156 = arith.mulf %154, %155 : vector<2x8x128xf32>
    %157 = vector.broadcast %147 : vector<2x1x128xf32> to vector<2x8x128xf32>
    %158 = vector.broadcast %153 : vector<1x8x128xf32> to vector<2x8x128xf32>
    %159 = arith.mulf %157, %158 : vector<2x8x128xf32>
    %160 = arith.subf %156, %159 : vector<2x8x128xf32>
    %161 = arith.addf %133, %160 : vector<2x8x128xf32>
    %162 = vector.broadcast %144 : vector<2x1x128xf32> to vector<2x8x128xf32>
    %163 = vector.broadcast %153 : vector<1x8x128xf32> to vector<2x8x128xf32>
    %164 = arith.mulf %162, %163 : vector<2x8x128xf32>
    %165 = vector.broadcast %147 : vector<2x1x128xf32> to vector<2x8x128xf32>
    %166 = vector.broadcast %150 : vector<1x8x128xf32> to vector<2x8x128xf32>
    %167 = arith.mulf %165, %166 : vector<2x8x128xf32>
    %168 = arith.addf %164, %167 : vector<2x8x128xf32>
    %169 = arith.addf %141, %168 : vector<2x8x128xf32>
    %c0_91 = arith.constant 0 : index
    %c0_92 = arith.constant 0 : index
    %c6 = arith.constant 6 : index
    %c0_93 = arith.constant 0 : index
    %170 = vector.load %arg2[%c0_91, %c0_92, %c6, %c0_93] : memref<1x2x8x128xbf16, #tpu.memory_space<vmem>>, vector<1x2x1x128xbf16>
    %171 = vector.shape_cast %170 : vector<1x2x1x128xbf16> to vector<2x1x128xbf16>
    %172 = arith.extf %171 : vector<2x1x128xbf16> to vector<2x1x128xf32>
    %c0_94 = arith.constant 0 : index
    %c0_95 = arith.constant 0 : index
    %c6_96 = arith.constant 6 : index
    %c0_97 = arith.constant 0 : index
    %173 = vector.load %arg3[%c0_94, %c0_95, %c6_96, %c0_97] : memref<1x2x8x128xbf16, #tpu.memory_space<vmem>>, vector<1x2x1x128xbf16>
    %174 = vector.shape_cast %173 : vector<1x2x1x128xbf16> to vector<2x1x128xbf16>
    %175 = arith.extf %174 : vector<2x1x128xbf16> to vector<2x1x128xf32>
    %c0_98 = arith.constant 0 : index
    %c6_99 = arith.constant 6 : index
    %c0_100 = arith.constant 0 : index
    %c0_101 = arith.constant 0 : index
    %176 = vector.load %arg4[%c0_98, %c6_99, %c0_100, %c0_101] : memref<1x8x8x128xbf16, #tpu.memory_space<vmem>>, vector<1x1x8x128xbf16>
    %177 = vector.shape_cast %176 : vector<1x1x8x128xbf16> to vector<1x8x128xbf16>
    %178 = arith.extf %177 : vector<1x8x128xbf16> to vector<1x8x128xf32>
    %c0_102 = arith.constant 0 : index
    %c6_103 = arith.constant 6 : index
    %c0_104 = arith.constant 0 : index
    %c0_105 = arith.constant 0 : index
    %179 = vector.load %arg5[%c0_102, %c6_103, %c0_104, %c0_105] : memref<1x8x8x128xbf16, #tpu.memory_space<vmem>>, vector<1x1x8x128xbf16>
    %180 = vector.shape_cast %179 : vector<1x1x8x128xbf16> to vector<1x8x128xbf16>
    %181 = arith.extf %180 : vector<1x8x128xbf16> to vector<1x8x128xf32>
    %182 = vector.broadcast %172 : vector<2x1x128xf32> to vector<2x8x128xf32>
    %183 = vector.broadcast %178 : vector<1x8x128xf32> to vector<2x8x128xf32>
    %184 = arith.mulf %182, %183 : vector<2x8x128xf32>
    %185 = vector.broadcast %175 : vector<2x1x128xf32> to vector<2x8x128xf32>
    %186 = vector.broadcast %181 : vector<1x8x128xf32> to vector<2x8x128xf32>
    %187 = arith.mulf %185, %186 : vector<2x8x128xf32>
    %188 = arith.subf %184, %187 : vector<2x8x128xf32>
    %189 = arith.addf %161, %188 : vector<2x8x128xf32>
    %190 = vector.broadcast %172 : vector<2x1x128xf32> to vector<2x8x128xf32>
    %191 = vector.broadcast %181 : vector<1x8x128xf32> to vector<2x8x128xf32>
    %192 = arith.mulf %190, %191 : vector<2x8x128xf32>
    %193 = vector.broadcast %175 : vector<2x1x128xf32> to vector<2x8x128xf32>
    %194 = vector.broadcast %178 : vector<1x8x128xf32> to vector<2x8x128xf32>
    %195 = arith.mulf %193, %194 : vector<2x8x128xf32>
    %196 = arith.addf %192, %195 : vector<2x8x128xf32>
    %197 = arith.addf %169, %196 : vector<2x8x128xf32>
    %c0_106 = arith.constant 0 : index
    %c0_107 = arith.constant 0 : index
    %c7 = arith.constant 7 : index
    %c0_108 = arith.constant 0 : index
    %198 = vector.load %arg2[%c0_106, %c0_107, %c7, %c0_108] : memref<1x2x8x128xbf16, #tpu.memory_space<vmem>>, vector<1x2x1x128xbf16>
    %199 = vector.shape_cast %198 : vector<1x2x1x128xbf16> to vector<2x1x128xbf16>
    %200 = arith.extf %199 : vector<2x1x128xbf16> to vector<2x1x128xf32>
    %c0_109 = arith.constant 0 : index
    %c0_110 = arith.constant 0 : index
    %c7_111 = arith.constant 7 : index
    %c0_112 = arith.constant 0 : index
    %201 = vector.load %arg3[%c0_109, %c0_110, %c7_111, %c0_112] : memref<1x2x8x128xbf16, #tpu.memory_space<vmem>>, vector<1x2x1x128xbf16>
    %202 = vector.shape_cast %201 : vector<1x2x1x128xbf16> to vector<2x1x128xbf16>
    %203 = arith.extf %202 : vector<2x1x128xbf16> to vector<2x1x128xf32>
    %c0_113 = arith.constant 0 : index
    %c7_114 = arith.constant 7 : index
    %c0_115 = arith.constant 0 : index
    %c0_116 = arith.constant 0 : index
    %204 = vector.load %arg4[%c0_113, %c7_114, %c0_115, %c0_116] : memref<1x8x8x128xbf16, #tpu.memory_space<vmem>>, vector<1x1x8x128xbf16>
    %205 = vector.shape_cast %204 : vector<1x1x8x128xbf16> to vector<1x8x128xbf16>
    %206 = arith.extf %205 : vector<1x8x128xbf16> to vector<1x8x128xf32>
    %c0_117 = arith.constant 0 : index
    %c7_118 = arith.constant 7 : index
    %c0_119 = arith.constant 0 : index
    %c0_120 = arith.constant 0 : index
    %207 = vector.load %arg5[%c0_117, %c7_118, %c0_119, %c0_120] : memref<1x8x8x128xbf16, #tpu.memory_space<vmem>>, vector<1x1x8x128xbf16>
    %208 = vector.shape_cast %207 : vector<1x1x8x128xbf16> to vector<1x8x128xbf16>
    %209 = arith.extf %208 : vector<1x8x128xbf16> to vector<1x8x128xf32>
    %210 = vector.broadcast %200 : vector<2x1x128xf32> to vector<2x8x128xf32>
    %211 = vector.broadcast %206 : vector<1x8x128xf32> to vector<2x8x128xf32>
    %212 = arith.mulf %210, %211 : vector<2x8x128xf32>
    %213 = vector.broadcast %203 : vector<2x1x128xf32> to vector<2x8x128xf32>
    %214 = vector.broadcast %209 : vector<1x8x128xf32> to vector<2x8x128xf32>
    %215 = arith.mulf %213, %214 : vector<2x8x128xf32>
    %216 = arith.subf %212, %215 : vector<2x8x128xf32>
    %217 = arith.addf %189, %216 : vector<2x8x128xf32>
    %218 = vector.broadcast %200 : vector<2x1x128xf32> to vector<2x8x128xf32>
    %219 = vector.broadcast %209 : vector<1x8x128xf32> to vector<2x8x128xf32>
    %220 = arith.mulf %218, %219 : vector<2x8x128xf32>
    %221 = vector.broadcast %203 : vector<2x1x128xf32> to vector<2x8x128xf32>
    %222 = vector.broadcast %206 : vector<1x8x128xf32> to vector<2x8x128xf32>
    %223 = arith.mulf %221, %222 : vector<2x8x128xf32>
    %224 = arith.addf %220, %223 : vector<2x8x128xf32>
    %225 = arith.addf %197, %224 : vector<2x8x128xf32>
    %c0_121 = arith.constant 0 : index
    %c0_122 = arith.constant 0 : index
    %c0_123 = arith.constant 0 : index
    %c0_124 = arith.constant 0 : index
    %226 = vector.load %arg6[%c0_121, %c0_122, %c0_123, %c0_124] : memref<1x2x8x128xf32, #tpu.memory_space<vmem>>, vector<1x2x8x128xf32>
    %227 = vector.shape_cast %226 : vector<1x2x8x128xf32> to vector<2x8x128xf32>
    %228 = vector.shape_cast %217 : vector<2x8x128xf32> to vector<1x2x8x128xf32>
    tpu.vector_store %arg6[%c0_121, %c0_122, %c0_123, %c0_124], %228 {strides = array<i32>} : memref<1x2x8x128xf32, #tpu.memory_space<vmem>>, vector<1x2x8x128xf32>,
    %c0_125 = arith.constant 0 : index
    %c0_126 = arith.constant 0 : index
    %c0_127 = arith.constant 0 : index
    %c0_128 = arith.constant 0 : index
    %229 = vector.load %arg7[%c0_125, %c0_126, %c0_127, %c0_128] : memref<1x2x8x128xf32, #tpu.memory_space<vmem>>, vector<1x2x8x128xf32>
    %230 = vector.shape_cast %229 : vector<1x2x8x128xf32> to vector<2x8x128xf32>
    %231 = vector.shape_cast %225 : vector<2x8x128xf32> to vector<1x2x8x128xf32>
    tpu.vector_store %arg7[%c0_125, %c0_126, %c0_127, %c0_128], %231 {strides = array<i32>} : memref<1x2x8x128xf32, #tpu.memory_space<vmem>>, vector<1x2x8x128xf32>,
    return
  }
  func.func @transform_0(%arg0: i32, %arg1: i32) -> (i32, i32, i32, i32) {
    %c0_i32 = arith.constant 0 : i32
    %c0_i32_0 = arith.constant 0 : i32
    %c0_i32_1 = arith.constant 0 : i32
    return %arg0, %c0_i32, %c0_i32_0, %arg1 : i32, i32, i32, i32
  }
  func.func @transform_1(%arg0: i32, %arg1: i32) -> (i32, i32, i32, i32) {
    %c0_i32 = arith.constant 0 : i32
    %c0_i32_0 = arith.constant 0 : i32
    %c0_i32_1 = arith.constant 0 : i32
    return %arg0, %c0_i32, %c0_i32_0, %arg1 : i32, i32, i32, i32
  }
  func.func @transform_2(%arg0: i32, %arg1: i32) -> (i32, i32, i32, i32) {
    %c0_i32 = arith.constant 0 : i32
    %c0_i32_0 = arith.constant 0 : i32
    %c0_i32_1 = arith.constant 0 : i32
    return %arg0, %c0_i32, %c0_i32_0, %arg1 : i32, i32, i32, i32
  }
  func.func @transform_3(%arg0: i32, %arg1: i32) -> (i32, i32, i32, i32) {
    %c0_i32 = arith.constant 0 : i32
    %c0_i32_0 = arith.constant 0 : i32
    %c0_i32_1 = arith.constant 0 : i32
    return %arg0, %c0_i32, %c0_i32_0, %arg1 : i32, i32, i32, i32
  }
  func.func @transform_4(%arg0: i32, %arg1: i32) -> (i32, i32, i32, i32) {
    %c0_i32 = arith.constant 0 : i32
    %c0_i32_0 = arith.constant 0 : i32
    %c0_i32_1 = arith.constant 0 : i32
    return %arg0, %c0_i32, %c0_i32_0, %arg1 : i32, i32, i32, i32
  }
  func.func @transform_5(%arg0: i32, %arg1: i32) -> (i32, i32, i32, i32) {
    %c0_i32 = arith.constant 0 : i32
    %c0_i32_0 = arith.constant 0 : i32
    %c0_i32_1 = arith.constant 0 : i32
    return %arg0, %c0_i32, %c0_i32_0, %arg1 : i32, i32, i32, i32
  }
}

module attributes {stable_mosaic.version = 11 : i64} {
  func.func @_linear_res_kernel(%arg0: i32, %arg1: i32, %arg2: memref<1x8x384xbf16, #tpu.memory_space<vmem>>, %arg3: memref<8x8xbf16, #tpu.memory_space<vmem>>, %arg4: memref<8x1xf32, #tpu.memory_space<vmem>>, %arg5: memref<1x8x384xbf16, #tpu.memory_space<vmem>>, %arg6: memref<1x8x384xbf16, #tpu.memory_space<vmem>>) attributes {dimension_semantics = [#tpu.dimension_semantics<parallel>, #tpu.dimension_semantics<parallel>], iteration_bounds = array<i64: 2, 3>, scalar_prefetch = 0 : i64, scratch_operands = 0 : i64, tpu.core_type = #tpu.core_type<tc>, window_params = [{transform_indices = @transform_0, window_bounds = array<i64: 1, 8, 384>}, {pipeline_mode = #tpu.pipeline_mode<synchronous>, transform_indices = @transform_1, window_bounds = array<i64: 8, 8>}, {pipeline_mode = #tpu.pipeline_mode<synchronous>, transform_indices = @transform_2, window_bounds = array<i64: 8, 1>}, {transform_indices = @transform_3, window_bounds = array<i64: 1, 8, 384>}, {transform_indices = @transform_4, window_bounds = array<i64: 1, 8, 384>}]} {
    %c0 = arith.constant 0 : index
    %c0_0 = arith.constant 0 : index
    %0 = vector.load %arg3[%c0, %c0_0] : memref<8x8xbf16, #tpu.memory_space<vmem>>, vector<8x8xbf16>
    %c0_1 = arith.constant 0 : index
    %c0_2 = arith.constant 0 : index
    %c0_3 = arith.constant 0 : index
    %1 = vector.load %arg2[%c0_1, %c0_2, %c0_3] : memref<1x8x384xbf16, #tpu.memory_space<vmem>>, vector<1x8x384xbf16>
    %2 = vector.shape_cast %1 : vector<1x8x384xbf16> to vector<8x384xbf16>
    %cst = arith.constant dense<0.000000e+00> : vector<8x384xf32>
    %3 = tpu.matmul %0, %2, %cst {dimension_numbers = #tpu.dot_dimension_numbers<[1], [0], [0], [1], [0, 0, 1, 1], [], []>} : vector<8x8xbf16>, vector<8x384xbf16>, vector<8x384xf32> -> vector<8x384xf32>
    %c0_4 = arith.constant 0 : index
    %c0_5 = arith.constant 0 : index
    %4 = vector.load %arg4[%c0_4, %c0_5] : memref<8x1xf32, #tpu.memory_space<vmem>>, vector<8x1xf32>
    %5 = vector.broadcast %4 : vector<8x1xf32> to vector<8x384xf32>
    %6 = arith.addf %3, %5 : vector<8x384xf32>
    %c0_6 = arith.constant 0 : index
    %c0_7 = arith.constant 0 : index
    %c0_8 = arith.constant 0 : index
    %7 = vector.load %arg5[%c0_6, %c0_7, %c0_8] : memref<1x8x384xbf16, #tpu.memory_space<vmem>>, vector<1x8x384xbf16>
    %8 = vector.shape_cast %7 : vector<1x8x384xbf16> to vector<8x384xbf16>
    %9 = arith.extf %8 : vector<8x384xbf16> to vector<8x384xf32>
    %10 = arith.addf %6, %9 : vector<8x384xf32>
    %cst_9 = arith.constant 5.000000e-01 : f32
    %11 = vector.broadcast %cst_9 : f32 to vector<8x384xf32>
    %12 = arith.mulf %11, %10 : vector<8x384xf32>
    %cst_10 = arith.constant 4.471500e-02 : f32
    %13 = vector.broadcast %cst_10 : f32 to vector<8x384xf32>
    %14 = arith.mulf %13, %10 : vector<8x384xf32>
    %15 = arith.mulf %14, %10 : vector<8x384xf32>
    %16 = arith.mulf %15, %10 : vector<8x384xf32>
    %17 = arith.addf %10, %16 : vector<8x384xf32>
    %cst_11 = arith.constant 0.797884583 : f32
    %18 = vector.broadcast %cst_11 : f32 to vector<8x384xf32>
    %19 = arith.mulf %18, %17 : vector<8x384xf32>
    %20 = math.tanh %19 : vector<8x384xf32>
    %cst_12 = arith.constant 1.000000e+00 : f32
    %21 = vector.broadcast %cst_12 : f32 to vector<8x384xf32>
    %22 = arith.addf %21, %20 : vector<8x384xf32>
    %23 = arith.mulf %12, %22 : vector<8x384xf32>
    %24 = arith.truncf %23 : vector<8x384xf32> to vector<8x384xbf16>
    %c0_13 = arith.constant 0 : index
    %c0_14 = arith.constant 0 : index
    %c0_15 = arith.constant 0 : index
    %25 = vector.load %arg6[%c0_13, %c0_14, %c0_15] : memref<1x8x384xbf16, #tpu.memory_space<vmem>>, vector<1x8x384xbf16>
    %26 = vector.shape_cast %25 : vector<1x8x384xbf16> to vector<8x384xbf16>
    %27 = vector.shape_cast %24 : vector<8x384xbf16> to vector<1x8x384xbf16>
    tpu.vector_store %arg6[%c0_13, %c0_14, %c0_15], %27 {strides = array<i32>} : memref<1x8x384xbf16, #tpu.memory_space<vmem>>, vector<1x8x384xbf16>,
    return
  }
  func.func @transform_0(%arg0: i32, %arg1: i32) -> (i32, i32, i32) {
    %c0_i32 = arith.constant 0 : i32
    %c0_i32_0 = arith.constant 0 : i32
    return %arg0, %c0_i32, %arg1 : i32, i32, i32
  }
  func.func @transform_1(%arg0: i32, %arg1: i32) -> (i32, i32) {
    %c0_i32 = arith.constant 0 : i32
    %c0_i32_0 = arith.constant 0 : i32
    %c0_i32_1 = arith.constant 0 : i32
    return %c0_i32, %c0_i32_0 : i32, i32
  }
  func.func @transform_2(%arg0: i32, %arg1: i32) -> (i32, i32) {
    %c0_i32 = arith.constant 0 : i32
    %c0_i32_0 = arith.constant 0 : i32
    %c0_i32_1 = arith.constant 0 : i32
    return %c0_i32, %c0_i32_0 : i32, i32
  }
  func.func @transform_3(%arg0: i32, %arg1: i32) -> (i32, i32, i32) {
    %c0_i32 = arith.constant 0 : i32
    %c0_i32_0 = arith.constant 0 : i32
    return %arg0, %c0_i32, %arg1 : i32, i32, i32
  }
  func.func @transform_4(%arg0: i32, %arg1: i32) -> (i32, i32, i32) {
    %c0_i32 = arith.constant 0 : i32
    %c0_i32_0 = arith.constant 0 : i32
    return %arg0, %c0_i32, %arg1 : i32, i32, i32
  }
}

module attributes {stable_mosaic.version = 11 : i64} {
  func.func @_linear_res_kernel(%arg0: i32, %arg1: i32, %arg2: memref<1x8x384xbf16, #tpu.memory_space<vmem>>, %arg3: memref<8x8xbf16, #tpu.memory_space<vmem>>, %arg4: memref<8x1xf32, #tpu.memory_space<vmem>>, %arg5: memref<1x8x384xbf16, #tpu.memory_space<vmem>>, %arg6: memref<1x8x384xbf16, #tpu.memory_space<vmem>>) attributes {dimension_semantics = [#tpu.dimension_semantics<parallel>, #tpu.dimension_semantics<parallel>], iteration_bounds = array<i64: 2, 3>, scalar_prefetch = 0 : i64, scratch_operands = 0 : i64, tpu.core_type = #tpu.core_type<tc>, window_params = [{transform_indices = @transform_0, window_bounds = array<i64: 1, 8, 384>}, {pipeline_mode = #tpu.pipeline_mode<synchronous>, transform_indices = @transform_1, window_bounds = array<i64: 8, 8>}, {pipeline_mode = #tpu.pipeline_mode<synchronous>, transform_indices = @transform_2, window_bounds = array<i64: 8, 1>}, {transform_indices = @transform_3, window_bounds = array<i64: 1, 8, 384>}, {transform_indices = @transform_4, window_bounds = array<i64: 1, 8, 384>}]} {
    %c0 = arith.constant 0 : index
    %c0_0 = arith.constant 0 : index
    %0 = vector.load %arg3[%c0, %c0_0] : memref<8x8xbf16, #tpu.memory_space<vmem>>, vector<8x8xbf16>
    %c0_1 = arith.constant 0 : index
    %c0_2 = arith.constant 0 : index
    %c0_3 = arith.constant 0 : index
    %1 = vector.load %arg2[%c0_1, %c0_2, %c0_3] : memref<1x8x384xbf16, #tpu.memory_space<vmem>>, vector<1x8x384xbf16>
    %2 = vector.shape_cast %1 : vector<1x8x384xbf16> to vector<8x384xbf16>
    %cst = arith.constant dense<0.000000e+00> : vector<8x384xf32>
    %3 = tpu.matmul %0, %2, %cst {dimension_numbers = #tpu.dot_dimension_numbers<[1], [0], [0], [1], [0, 0, 1, 1], [], []>} : vector<8x8xbf16>, vector<8x384xbf16>, vector<8x384xf32> -> vector<8x384xf32>
    %c0_4 = arith.constant 0 : index
    %c0_5 = arith.constant 0 : index
    %4 = vector.load %arg4[%c0_4, %c0_5] : memref<8x1xf32, #tpu.memory_space<vmem>>, vector<8x1xf32>
    %5 = vector.broadcast %4 : vector<8x1xf32> to vector<8x384xf32>
    %6 = arith.addf %3, %5 : vector<8x384xf32>
    %c0_6 = arith.constant 0 : index
    %c0_7 = arith.constant 0 : index
    %c0_8 = arith.constant 0 : index
    %7 = vector.load %arg5[%c0_6, %c0_7, %c0_8] : memref<1x8x384xbf16, #tpu.memory_space<vmem>>, vector<1x8x384xbf16>
    %8 = vector.shape_cast %7 : vector<1x8x384xbf16> to vector<8x384xbf16>
    %9 = arith.extf %8 : vector<8x384xbf16> to vector<8x384xf32>
    %10 = arith.addf %6, %9 : vector<8x384xf32>
    %11 = arith.truncf %10 : vector<8x384xf32> to vector<8x384xbf16>
    %c0_9 = arith.constant 0 : index
    %c0_10 = arith.constant 0 : index
    %c0_11 = arith.constant 0 : index
    %12 = vector.load %arg6[%c0_9, %c0_10, %c0_11] : memref<1x8x384xbf16, #tpu.memory_space<vmem>>, vector<1x8x384xbf16>
    %13 = vector.shape_cast %12 : vector<1x8x384xbf16> to vector<8x384xbf16>
    %14 = vector.shape_cast %11 : vector<8x384xbf16> to vector<1x8x384xbf16>
    tpu.vector_store %arg6[%c0_9, %c0_10, %c0_11], %14 {strides = array<i32>} : memref<1x8x384xbf16, #tpu.memory_space<vmem>>, vector<1x8x384xbf16>,
    return
  }
  func.func @transform_0(%arg0: i32, %arg1: i32) -> (i32, i32, i32) {
    %c0_i32 = arith.constant 0 : i32
    %c0_i32_0 = arith.constant 0 : i32
    return %arg0, %c0_i32, %arg1 : i32, i32, i32
  }
  func.func @transform_1(%arg0: i32, %arg1: i32) -> (i32, i32) {
    %c0_i32 = arith.constant 0 : i32
    %c0_i32_0 = arith.constant 0 : i32
    %c0_i32_1 = arith.constant 0 : i32
    return %c0_i32, %c0_i32_0 : i32, i32
  }
  func.func @transform_2(%arg0: i32, %arg1: i32) -> (i32, i32) {
    %c0_i32 = arith.constant 0 : i32
    %c0_i32_0 = arith.constant 0 : i32
    %c0_i32_1 = arith.constant 0 : i32
    return %c0_i32, %c0_i32_0 : i32, i32
  }
  func.func @transform_3(%arg0: i32, %arg1: i32) -> (i32, i32, i32) {
    %c0_i32 = arith.constant 0 : i32
    %c0_i32_0 = arith.constant 0 : i32
    return %arg0, %c0_i32, %arg1 : i32, i32, i32
  }
  func.func @transform_4(%arg0: i32, %arg1: i32) -> (i32, i32, i32) {
    %c0_i32 = arith.constant 0 : i32
    %c0_i32_0 = arith.constant 0 : i32
    return %arg0, %c0_i32, %arg1 : i32, i32, i32
  }
}

module attributes {stable_mosaic.version = 11 : i64} {
  func.func @_head_kernel(%arg0: i32, %arg1: i32, %arg2: memref<1x8x256xbf16, #tpu.memory_space<vmem>>, %arg3: memref<32x8xbf16, #tpu.memory_space<vmem>>, %arg4: memref<32x1xf32, #tpu.memory_space<vmem>>, %arg5: memref<1x32xbf16, #tpu.memory_space<vmem>>, %arg6: memref<1x1xf32, #tpu.memory_space<vmem>>, %arg7: memref<1x1x256xf32, #tpu.memory_space<vmem>>) attributes {dimension_semantics = [#tpu.dimension_semantics<parallel>, #tpu.dimension_semantics<parallel>], iteration_bounds = array<i64: 2, 2>, scalar_prefetch = 0 : i64, scratch_operands = 0 : i64, tpu.core_type = #tpu.core_type<tc>, window_params = [{transform_indices = @transform_0, window_bounds = array<i64: 1, 8, 256>}, {pipeline_mode = #tpu.pipeline_mode<synchronous>, transform_indices = @transform_1, window_bounds = array<i64: 32, 8>}, {pipeline_mode = #tpu.pipeline_mode<synchronous>, transform_indices = @transform_2, window_bounds = array<i64: 32, 1>}, {pipeline_mode = #tpu.pipeline_mode<synchronous>, transform_indices = @transform_3, window_bounds = array<i64: 1, 32>}, {pipeline_mode = #tpu.pipeline_mode<synchronous>, transform_indices = @transform_4, window_bounds = array<i64: 1, 1>}, {transform_indices = @transform_5, window_bounds = array<i64: 1, 1, 256>}]} {
    %c0 = arith.constant 0 : index
    %c0_0 = arith.constant 0 : index
    %0 = vector.load %arg3[%c0, %c0_0] : memref<32x8xbf16, #tpu.memory_space<vmem>>, vector<32x8xbf16>
    %c0_1 = arith.constant 0 : index
    %c0_2 = arith.constant 0 : index
    %c0_3 = arith.constant 0 : index
    %1 = vector.load %arg2[%c0_1, %c0_2, %c0_3] : memref<1x8x256xbf16, #tpu.memory_space<vmem>>, vector<1x8x256xbf16>
    %2 = vector.shape_cast %1 : vector<1x8x256xbf16> to vector<8x256xbf16>
    %cst = arith.constant dense<0.000000e+00> : vector<32x256xf32>
    %3 = tpu.matmul %0, %2, %cst {dimension_numbers = #tpu.dot_dimension_numbers<[1], [0], [0], [1], [0, 0, 1, 1], [], []>} : vector<32x8xbf16>, vector<8x256xbf16>, vector<32x256xf32> -> vector<32x256xf32>
    %c0_4 = arith.constant 0 : index
    %c0_5 = arith.constant 0 : index
    %4 = vector.load %arg4[%c0_4, %c0_5] : memref<32x1xf32, #tpu.memory_space<vmem>>, vector<32x1xf32>
    %5 = vector.broadcast %4 : vector<32x1xf32> to vector<32x256xf32>
    %6 = arith.addf %3, %5 : vector<32x256xf32>
    %cst_6 = arith.constant 5.000000e-01 : f32
    %7 = vector.broadcast %cst_6 : f32 to vector<32x256xf32>
    %8 = arith.mulf %7, %6 : vector<32x256xf32>
    %cst_7 = arith.constant 4.471500e-02 : f32
    %9 = vector.broadcast %cst_7 : f32 to vector<32x256xf32>
    %10 = arith.mulf %9, %6 : vector<32x256xf32>
    %11 = arith.mulf %10, %6 : vector<32x256xf32>
    %12 = arith.mulf %11, %6 : vector<32x256xf32>
    %13 = arith.addf %6, %12 : vector<32x256xf32>
    %cst_8 = arith.constant 0.797884583 : f32
    %14 = vector.broadcast %cst_8 : f32 to vector<32x256xf32>
    %15 = arith.mulf %14, %13 : vector<32x256xf32>
    %16 = math.tanh %15 : vector<32x256xf32>
    %cst_9 = arith.constant 1.000000e+00 : f32
    %17 = vector.broadcast %cst_9 : f32 to vector<32x256xf32>
    %18 = arith.addf %17, %16 : vector<32x256xf32>
    %19 = arith.mulf %8, %18 : vector<32x256xf32>
    %c0_10 = arith.constant 0 : index
    %c0_11 = arith.constant 0 : index
    %20 = vector.load %arg5[%c0_10, %c0_11] : memref<1x32xbf16, #tpu.memory_space<vmem>>, vector<1x32xbf16>
    %21 = arith.truncf %19 : vector<32x256xf32> to vector<32x256xbf16>
    %cst_12 = arith.constant dense<0.000000e+00> : vector<1x256xf32>
    %22 = tpu.matmul %20, %21, %cst_12 {dimension_numbers = #tpu.dot_dimension_numbers<[1], [0], [0], [1], [0, 0, 1, 1], [], []>} : vector<1x32xbf16>, vector<32x256xbf16>, vector<1x256xf32> -> vector<1x256xf32>
    %c0_13 = arith.constant 0 : index
    %c0_14 = arith.constant 0 : index
    %23 = vector.load %arg6[%c0_13, %c0_14] : memref<1x1xf32, #tpu.memory_space<vmem>>, vector<1x1xf32>
    %24 = vector.broadcast %23 : vector<1x1xf32> to vector<1x256xf32>
    %25 = arith.addf %22, %24 : vector<1x256xf32>
    %c0_15 = arith.constant 0 : index
    %c0_16 = arith.constant 0 : index
    %c0_17 = arith.constant 0 : index
    %26 = vector.load %arg7[%c0_15, %c0_16, %c0_17] : memref<1x1x256xf32, #tpu.memory_space<vmem>>, vector<1x1x256xf32>
    %27 = vector.shape_cast %26 : vector<1x1x256xf32> to vector<1x256xf32>
    %28 = vector.shape_cast %25 : vector<1x256xf32> to vector<1x1x256xf32>
    tpu.vector_store %arg7[%c0_15, %c0_16, %c0_17], %28 {strides = array<i32>} : memref<1x1x256xf32, #tpu.memory_space<vmem>>, vector<1x1x256xf32>,
    return
  }
  func.func @transform_0(%arg0: i32, %arg1: i32) -> (i32, i32, i32) {
    %c0_i32 = arith.constant 0 : i32
    %c0_i32_0 = arith.constant 0 : i32
    return %arg0, %c0_i32, %arg1 : i32, i32, i32
  }
  func.func @transform_1(%arg0: i32, %arg1: i32) -> (i32, i32) {
    %c0_i32 = arith.constant 0 : i32
    %c0_i32_0 = arith.constant 0 : i32
    %c0_i32_1 = arith.constant 0 : i32
    return %c0_i32, %c0_i32_0 : i32, i32
  }
  func.func @transform_2(%arg0: i32, %arg1: i32) -> (i32, i32) {
    %c0_i32 = arith.constant 0 : i32
    %c0_i32_0 = arith.constant 0 : i32
    %c0_i32_1 = arith.constant 0 : i32
    return %c0_i32, %c0_i32_0 : i32, i32
  }
  func.func @transform_3(%arg0: i32, %arg1: i32) -> (i32, i32) {
    %c0_i32 = arith.constant 0 : i32
    %c0_i32_0 = arith.constant 0 : i32
    %c0_i32_1 = arith.constant 0 : i32
    return %c0_i32, %c0_i32_0 : i32, i32
  }
  func.func @transform_4(%arg0: i32, %arg1: i32) -> (i32, i32) {
    %c0_i32 = arith.constant 0 : i32
    %c0_i32_0 = arith.constant 0 : i32
    %c0_i32_1 = arith.constant 0 : i32
    return %c0_i32, %c0_i32_0 : i32, i32
  }
  func.func @transform_5(%arg0: i32, %arg1: i32) -> (i32, i32, i32) {
    %c0_i32 = arith.constant 0 : i32
    %c0_i32_0 = arith.constant 0 : i32
    return %arg0, %c0_i32, %arg1 : i32, i32, i32
  }
}

</mosaic_0001>

<bundles_post_ra>
// kernel: factorized_fno3d_forward.6
= control target key start
LH: loop header
LB: loop body
LE: loop exit
PB: predicated region body
PF: predicated region fallthrough
CT: control target
= control target key end

     0   :  { %s504_s12 = smov 0   ;;  %s506_s13 = smov 0   ;;  %s561_s0 = inlined_call_operand.vmem [shape: bf16[2,3,512], index: 0, kind: input, shape index: {}]   ;;  %s562_s1 = inlined_call_operand.vmem [shape: bf16[8,3], index: 1, kind: input, shape index: {}]   ;;  %s563_s2 = inlined_call_operand.vmem [shape: f32[8,1], index: 2, kind: input, shape index: {}]   ;;  %s564_s3 = inlined_call_operand.vmem [shape: bf16[2,8,512], index: 3, kind: output, shape index: {}]  }
   0x1   :  { %s508_s14 = smov 0   ;;  %s510_s15 = smov 0  }
   0x2   :  { %s512_s16 = smov 0  }
   0x3 LB: > { %s22_s17 = sadd.s32 1, %s472_s14  ;;  %s25_s18 = sadd.s32 1, %s476_s15  ;;  %s480_s16 = sphi %s512_s16, %s13_s16   ;;  %s476_s15 = sphi %s510_s15, %s568_s15   ;;  %s472_s14 = sphi %s508_s14, %s567_s14   ;;  %s468_s13 = sphi %s506_s13, %s566_s13   ;;  %s464_s12 = sphi %s504_s12, %s565_s12  }
   0x4   : > { %p23_p0 = scmp.ge.s32.totalorder %s22_s17, 2  ;;  %p386_p1 = scmp.ge.s32.totalorder %s480_s16, 1 }
   0x5   : > { %p158_p2 = scmp.lt.s32.totalorder %s480_s16, 5 }
   0x6   : > { %s570_s17 = smov (%p23_p0, %s22_s17), 0  ;;  %s572_s18 = smov (!%p23_p0, %s25_s18), %s476_s15 }
   0x7   : > { %p159_p3 = pnand %p386_p1, %p158_p2  ;;  %p27_p4 = scmp.ge.s32.totalorder %s572_s18, 2 }
   0x8   : > { %s387_s19 = sshll.u32 (!%p159_p3), %s464_s12, 1  ;;  %p191_p5 = scmp.lt.s32.totalorder (!%p159_p3), %s468_s13, 1  ;;  %vm232_vm0 = vcmask (!%p159_p3), 1040384   ;;  %v482_v0 = vmov (!%p159_p3), 0   ;;  %v213_v1 = vld [vmem:[%s563_s2] sm:$0xff] (!%p159_p3)  ;;  %vm233_vm1 = vcmask (!%p159_p3), 1041408  }
   0x9   : > { %s574_s18 = smov (%p27_p4, %s572_s18), 0  ;;  %162 = sbr.rel (%p159_p3) target bundleno = 248 (0xf8), region = 32 }
   0xa   : > { %p193_p6 = scmp.lt.s32.totalorder (!%p159_p3), %s387_s19, 3  ;;  %274 = vmatprep.mubr.bf16.mxu0 (!%p159_p3), %v482_v0  ;;  %441 = vset.pattern.permute.xlu0 (!%p159_p3), %v482_v0  ;;  %v483_v2 = vmov (!%p159_p3), 65535   ;;  %v211_v9 = vld [vmem:[%s562_s1] sm:$0xf] (!%p159_p3)  ;;  %vm228_vm2 = vcmask (!%p159_p3), 23552  }
   0xb   : > { %216 = vperm.xlu0 (!%p159_p3), %441, %v213_v1   ;;  %v234_v3 = vsel (!%p159_p3), %vm232_vm0, 4294967295, %v483_v2 }
   0xc   : > { %v235_v4 = vsel (!%p159_p3), %vm233_vm1, %v234_v3, 0 }
  0x10   : > { %s576_s13 = smov (!%p191_p5, %s468_s13), 1  ;;  %s578_s19 = smov (!%p193_p6, %s387_s19), 3 }
  0x11   : > { %s388_s22 = sshll.u32 %s576_s13, 2 }
  0x12   : > { %s196_s23 = sadd.s32 %s388_s22, %s578_s19 }
  0x13   : > { %s389_s24 = sshll.u32 %s196_s23, 1  ;;  %s392_s30 = sshll.u32 %s196_s23, 2 }
  0x14   : > { %s198_s27 = scalar_lea.vmem %s561_s0, %s389_s24  ;;  %s208_s6 = scalar_lea.vmem %s564_s3, %s392_s30 }
  0x15   : > { %v393_v5 = vld.sshfl [vmem:[%s198_s27] sm:$0x33 pattern:$0x76325410] }
  0x16   : > { %v227_v6 = vcombine.high %v393_v5, %v393_v5  ;;  %v237_v7 = vand.u32 %v393_v5, %v235_v4 }
  0x18   : > { %v240_v8 = vand.u32 %v235_v4, %v227_v6 }
  0x1a   : > { %242 = vmatprep.subr.bf16.mxu0 %v240_v8 }
  0x1b   : > { %243 = vmatpush1.bf16.msra.mxu0 %v237_v7 }
  0x1e   : > { %394 = vmatmul.mubr.msk.bf16.vlgmr.msra.gmra.mrb[0].mxu0 %vm228_vm2, %v211_v9 }
  0x8a   : > { %v217_v10 = vpop.permute.xlu0 %216 }
  0xf1   : > { %v276_v11 = vpop.f32.mrb[0].mxu0 }
  0xf2   : > { %v277_v12 = vadd.f32 %v276_v11, %v217_v10  ;;  %v278_v13 = vpop.f32.mrb[1].mxu0 }
  0xf3   : > { %v279_v14 = vadd.f32 %v278_v13, %v217_v10  ;;  %v280_v15 = vpop.f32.mrb[2].mxu0 }
  0xf4   : > { %v281_v16 = vpop.f32.mrb[3].mxu0 }
  0xf5   : > { %v398_v17 = vpack.c.bf16 %v279_v14, %v277_v12 }
  0xf7   : > { %291 = vst [vmem:[%s208_s6] sm:$0xff] %v398_v17 }
  0xf8 PF: > { %s13_s16 = sadd.s32 1, %s480_s16   ;;  %s565_s12 = smov %s472_s14 }
  0xf9   : > { %p10_p7 = scmp.ge.s32.totalorder %s13_s16, 6   ;;  %s566_s13 = smov %s476_s15 }
  0xfa   : > { %s567_s14 = smov %s570_s17  ;;  %s568_s15 = smov %s574_s18 }
  0xfb   :  { %12 = sbr.rel (!%p10_p7) target bundleno = 3 (0x3), region = 62 }

// kernel: factorized_fno3d_forward.7
= control target key start
LH: loop header
LB: loop body
LE: loop exit
PB: predicated region body
PF: predicated region fallthrough
CT: control target
= control target key end

     0   :  { %s1009_s18 = smov 0   ;;  %s1011_s19 = smov 0   ;;  %s1371_s0 = inlined_call_operand.vmem [shape: bf16[4,2,8,128], index: 0, kind: input, shape index: {}]   ;;  %s1372_s1 = inlined_call_operand.vmem [shape: bf16[4,2,8,128], index: 1, kind: input, shape index: {}]   ;;  %s1373_s2 = inlined_call_operand.vmem [shape: bf16[4,8,8,128], index: 2, kind: input, shape index: {}]   ;;  %s1374_s3 = inlined_call_operand.vmem [shape: bf16[4,8,8,128], index: 3, kind: input, shape index: {}]   ;;  %s1375_s4 = inlined_call_operand.vmem [shape: f32[4,2,8,128], index: 4, kind: output, shape index: {0}]   ;;  %s1376_s5 = inlined_call_operand.vmem [shape: f32[4,2,8,128], index: 5, kind: output, shape index: {1}]  }
   0x1   :  { %s1013_s20 = smov 0  }
   0x2 LB: > { %s28_s21 = sadd.s32 1, %s973_s19  ;;  %p896_p0 = scmp.ge.s32.totalorder %s977_s20, 1  ;;  %s977_s20 = sphi %s1013_s20, %s16_s20   ;;  %s973_s19 = sphi %s1011_s19, %s1387_s19   ;;  %s969_s18 = sphi %s1009_s18, %s1386_s18  }
   0x3   : > { %p30_p1 = scmp.ge.s32.totalorder %s28_s21, 4  ;;  %p256_p2 = scmp.lt.s32.totalorder %s977_s20, 5 }
   0x5   : > { %s1389_s21 = smov (%p30_p1, %s28_s21), 0  ;;  %p257_p3 = pnand %p896_p0, %p256_p2 }
   0x7   : > { %260 = sbr.rel (%p257_p3) target bundleno = 78 (0x4e), region = 36 }
   0xe   : > { %p322_p4 = scmp.lt.s32.totalorder %s969_s18, 3  ;;  %v382_v0 = vlaneseq }
  0x10   : > { %s1391_s18 = smov (!%p322_p4, %s969_s18), 3  ;;  %v383_v1 = vshrl.u32 %v382_v0, 7 }
  0x11   : > { %s925_s22 = sshll.u32 %s1391_s18, 3  ;;  %s927_s23 = sshll.u32 %s1391_s18, 5 }
  0x12   : > { %v1031_v2 = vsub.s32 0, %v383_v1  ;;  %v1033_v3 = vsub.s32 1, %v383_v1  ;;  %v1035_v4 = vsub.s32 2, %v383_v1  ;;  %s1040_s26 = scalar_lea.vmem %s1371_s0, %s925_s22  ;;  %s1045_s29 = scalar_lea.vmem %s1372_s1, %s925_s22  ;;  %v1047_v5 = vsub.s32 3, %v383_v1 }
  0x13   : > { %v1049_v6 = vsub.s32 4, %v383_v1  ;;  %v1051_v7 = vsub.s32 5, %v383_v1  ;;  %v1053_v8 = vsub.s32 6, %v383_v1  ;;  %s1058_s7 = scalar_lea.vmem %s1373_s2, %s927_s23  ;;  %s1063_s10 = scalar_lea.vmem %s1374_s3, %s927_s23  ;;  %v370_v9 = vld [vmem:[%s1040_s26] sm:$0x1]  ;;  %v1071_v18 = vsub.s32 7, %v383_v1 }
  0x14   : > { %v374_v10 = vld [vmem:[%s1045_s29] sm:$0x1]  ;;  %v452_v11 = vld [vmem:[%s1040_s26] sm:$0x2]  ;;  %v372_v12 = vunpack.c.l.bf16 %v370_v9  ;;  %v911_v23 = vld [vmem:[%s1058_s7 + $0x8] sm:$0xff]   ;;  %s929_s11 = sshll.u32 %s1391_s18, 4 }
  0x15   : > { %v376_v13 = vunpack.c.l.bf16 %v374_v10  ;;  %v378_v14 = vld [vmem:[%s1058_s7] sm:$0xff]   ;;  %v454_v16 = vunpack.c.l.bf16 %v452_v11  ;;  %v912_v24 = vld [vmem:[%s1063_s10 + $0x8] sm:$0xff]   ;;  %v1095_v30 = vunpack.c.l.bf16 %v911_v23  ;;  %v915_v39 = vld [vmem:[%s1058_s7 + $0x10] sm:$0xff]   ;;  %v1118_v42 = vunpack.c.h.bf16 %v911_v23  ;;  %s1231_s14 = scalar_lea.vmem %s1375_s4, %s929_s11  ;;  %s369_s17 = scalar_lea.vmem %s1376_s5, %s929_s11 }
  0x16   : > { %v380_v15 = vld [vmem:[%s1063_s10] sm:$0xff]   ;;  %v1073_v19 = vunpack.c.l.bf16 %v378_v14  ;;  %v1077_v21 = vunpack.c.h.bf16 %v378_v14  ;;  %v1084_v25 = vrot.slane %v372_v12, %v1031_v2  ;;  %v1090_v27 = vrot.slane %v372_v12, %v1033_v3  ;;  %v916_v44 = vld [vmem:[%s1063_s10 + $0x10] sm:$0xff]   ;;  %v919_v63 = vld [vmem:[%s1058_s7 + $0x18] sm:$0xff]  }
  0x17   : > { %v456_v17 = vld [vmem:[%s1045_s29] sm:$0x2]  ;;  %v1075_v20 = vunpack.c.l.bf16 %v380_v15  ;;  %v1079_v22 = vunpack.c.h.bf16 %v380_v15  ;;  %v1087_v26 = vrot.slane %v376_v13, %v1031_v2  ;;  %v1093_v28 = vrot.slane %v376_v13, %v1033_v3  ;;  %v536_v37 = vld [vmem:[%s1040_s26] sm:$0x4]  ;;  %v620_v57 = vld [vmem:[%s1040_s26] sm:$0x8] }
  0x18   : > { %v458_v29 = vunpack.c.l.bf16 %v456_v17  ;;  %v1097_v31 = vunpack.c.l.bf16 %v912_v24  ;;  %v1100_v32 = vrot.slane %v454_v16, %v1035_v4  ;;  %v390_v33 = vmul.f32 %v1084_v25, %v1073_v19  ;;  %v540_v38 = vld [vmem:[%s1045_s29] sm:$0x4]  ;;  %v624_v62 = vld [vmem:[%s1045_s29] sm:$0x8]  ;;  %v920_v11 = vld [vmem:[%s1063_s10 + $0x18] sm:$0xff]  }
  0x19   : > { %v400_v34 = vmul.f32 %v1087_v26, %v1075_v20  ;;  %v428_v35 = vmul.f32 %v1090_v27, %v1077_v21  ;;  %v438_v36 = vmul.f32 %v1093_v28, %v1079_v22  ;;  %v1120_v43 = vunpack.c.h.bf16 %v912_v24 }
  0x1a   : > { %v474_v40 = vmul.f32 %v1100_v32, %v1095_v30  ;;  %v1116_v41 = vrot.slane %v458_v29, %v1035_v4  ;;  %v1124_v47 = vrot.slane %v454_v16, %v1047_v5  ;;  %v1127_v48 = vrot.slane %v458_v29, %v1047_v5 }
  0x1b   : > { %v402_v45 = vsub.f32 %v390_v33, %v400_v34  ;;  %v440_v46 = vsub.f32 %v428_v35, %v438_v36  ;;  %v538_v50 = vunpack.c.l.bf16 %v536_v37  ;;  %v542_v51 = vunpack.c.l.bf16 %v540_v38  ;;  %v371_v36 = vld [vmem:[%s1040_s26 + $0x4] sm:$0x1]  ;;  %v453_v38 = vld [vmem:[%s1040_s26 + $0x4] sm:$0x2] }
  0x1c   : > { %v484_v49 = vmul.f32 %v1116_v41, %v1097_v31  ;;  %v1131_v52 = vunpack.c.l.bf16 %v915_v39  ;;  %v512_v54 = vmul.f32 %v1124_v47, %v1118_v42  ;;  %v522_v55 = vmul.f32 %v1127_v48, %v1120_v43  ;;  %v375_v37 = vld [vmem:[%s1045_s29 + $0x4] sm:$0x1] }
  0x1d   : > { %v442_v53 = vadd.f32 %v440_v46, %v402_v45  ;;  %v1137_v56 = vunpack.c.l.bf16 %v916_v44  ;;  %v1141_v59 = vrot.slane %v538_v50, %v1049_v6  ;;  %v1144_v60 = vrot.slane %v542_v51, %v1049_v6  ;;  %v457_v46 = vld [vmem:[%s1045_s29 + $0x4] sm:$0x2] }
  0x1e   : > { %v486_v58 = vsub.f32 %v474_v40, %v484_v49  ;;  %v1146_v61 = vunpack.c.h.bf16 %v915_v39  ;;  %v524_v0 = vsub.f32 %v512_v54, %v522_v55  ;;  %v1150_v1 = vunpack.c.h.bf16 %v916_v44 }
  0x1f   : > { %v1153_v9 = vrot.slane %v538_v50, %v1051_v7  ;;  %v1156_v10 = vrot.slane %v542_v51, %v1051_v7  ;;  %v558_v13 = vmul.f32 %v1141_v59, %v1131_v52  ;;  %v568_v14 = vmul.f32 %v1144_v60, %v1137_v56 }
  0x20   : > { %v488_v12 = vadd.f32 %v486_v58, %v442_v53  ;;  %v622_v15 = vunpack.c.l.bf16 %v620_v57  ;;  %v626_v23 = vunpack.c.l.bf16 %v624_v62  ;;  %v1167_v24 = vunpack.c.l.bf16 %v919_v63 }
  0x21   : > { %v596_v16 = vmul.f32 %v1153_v9, %v1146_v61  ;;  %v606_v17 = vmul.f32 %v1156_v10, %v1150_v1  ;;  %v570_v33 = vsub.f32 %v558_v13, %v568_v14  ;;  %v1169_v34 = vunpack.c.l.bf16 %v920_v11 }
  0x22   : > { %v526_v29 = vadd.f32 %v524_v0, %v488_v12  ;;  %v1172_v35 = vrot.slane %v622_v15, %v1053_v8  ;;  %v1178_v40 = vrot.slane %v626_v23, %v1053_v8  ;;  %v1180_v44 = vunpack.c.h.bf16 %v919_v63 }
  0x23   : > { %v608_v39 = vsub.f32 %v596_v16, %v606_v17  ;;  %v1182_v45 = vunpack.c.h.bf16 %v920_v11  ;;  %v1188_v51 = vrot.slane %v622_v15, %v1071_v18  ;;  %v1191_v53 = vrot.slane %v626_v23, %v1071_v18 }
  0x24   : > { %v572_v49 = vadd.f32 %v570_v33, %v526_v29  ;;  %v642_v50 = vmul.f32 %v1172_v35, %v1167_v24  ;;  %v652_v54 = vmul.f32 %v1178_v40, %v1169_v34  ;;  %v373_v55 = vunpack.c.l.bf16 %v371_v36  ;;  %v537_v33 = vld [vmem:[%s1040_s26 + $0x4] sm:$0x4] }
  0x25   : > { %v377_v57 = vunpack.c.l.bf16 %v375_v37  ;;  %v455_v58 = vunpack.c.l.bf16 %v453_v38  ;;  %v680_v63 = vmul.f32 %v1188_v51, %v1180_v44  ;;  %v690_v0 = vmul.f32 %v1191_v53, %v1182_v45 }
  0x26   : > { %v610_v62 = vadd.f32 %v608_v39, %v572_v49  ;;  %v459_v11 = vunpack.c.l.bf16 %v457_v46  ;;  %v654_v12 = vsub.f32 %v642_v50, %v652_v54  ;;  %v1201_v13 = vrot.slane %v373_v55, %v1031_v2  ;;  %v621_v50 = vld [vmem:[%s1040_s26 + $0x4] sm:$0x8] }
  0x27   : > { %v1204_v14 = vrot.slane %v377_v57, %v1031_v2  ;;  %v1207_v15 = vrot.slane %v373_v55, %v1033_v3  ;;  %v692_v16 = vsub.f32 %v680_v63, %v690_v0  ;;  %v1210_v17 = vrot.slane %v377_v57, %v1033_v3  ;;  %v541_v3 = vld [vmem:[%s1045_s29 + $0x4] sm:$0x4]  ;;  %v625_v63 = vld [vmem:[%s1045_s29 + $0x4] sm:$0x8] }
  0x28   : > { %v1213_v23 = vrot.slane %v455_v58, %v1035_v4  ;;  %v1216_v29 = vrot.slane %v459_v11, %v1035_v4  ;;  %v656_v36 = vadd.f32 %v654_v12, %v610_v62  ;;  %v391_v2 = vmul.f32 %v1201_v13, %v1073_v19 }
  0x29   : > { %1380 = vst [vmem:[#allocation2_spill] sm:$0xff] %v1210_v17  ;;  %v401_v37 = vmul.f32 %v1204_v14, %v1075_v20  ;;  %v429_v38 = vmul.f32 %v1207_v15, %v1077_v21  ;;  %v439_v4 = vmul.f32 %v1210_v17, %v1079_v22  ;;  %v1240_v49 = vrot.slane %v455_v58, %v1047_v5 }
  0x2a   : > { %1381 = vst [vmem:[#allocation3_spill] sm:$0xff] %v1213_v23  ;;  %1382 = vst [vmem:[#allocation4_spill] sm:$0xff] %v1216_v29  ;;  %v475_v39 = vmul.f32 %v1213_v23, %v1095_v30  ;;  %v485_v46 = vmul.f32 %v1216_v29, %v1097_v31  ;;  %v694_v54 = vadd.f32 %v692_v16, %v656_v36  ;;  %v539_v62 = vunpack.c.l.bf16 %v537_v33 }
  0x2b   : > { %v403_v55 = vsub.f32 %v391_v2, %v401_v37  ;;  %v1244_v57 = vrot.slane %v459_v11, %v1047_v5  ;;  %v441_v0 = vsub.f32 %v429_v38, %v439_v4  ;;  %v513_v17 = vmul.f32 %v1240_v49, %v1118_v42 }
  0x2c   : > { %v487_v12 = vsub.f32 %v475_v39, %v485_v46  ;;  %v543_v23 = vunpack.c.l.bf16 %v541_v3  ;;  %704 = vst [vmem:[%s1231_s14] sm:$0xff] %v694_v54  ;;  %v1253_v58 = vrot.slane %v539_v62, %v1049_v6  ;;  %v1256_v16 = vrot.slane %v539_v62, %v1051_v7 }
  0x2d   : > { %v523_v29 = vmul.f32 %v1244_v57, %v1120_v43  ;;  %v623_v5 = vunpack.c.l.bf16 %v621_v50  ;;  %v443_v11 = vadd.f32 %v441_v0, %v403_v55  ;;  %v627_v2 = vunpack.c.l.bf16 %v625_v63 }
  0x2e   : > { %v1259_v33 = vrot.slane %v543_v23, %v1049_v6  ;;  %v1262_v36 = vrot.slane %v543_v23, %v1051_v7  ;;  %v559_v38 = vmul.f32 %v1253_v58, %v1131_v52  ;;  %v597_v3 = vmul.f32 %v1256_v16, %v1146_v61 }
  0x2f   : > { %v525_v37 = vsub.f32 %v513_v17, %v523_v29  ;;  %v1269_v4 = vrot.slane %v623_v5, %v1053_v8  ;;  %v489_v39 = vadd.f32 %v487_v12, %v443_v11  ;;  %v1276_v7 = vrot.slane %v627_v2, %v1053_v8 }
  0x30   : > { %v569_v46 = vmul.f32 %v1259_v33, %v1137_v56  ;;  %v607_v6 = vmul.f32 %v1262_v36, %v1150_v1  ;;  %v1281_v23 = vrot.slane %v623_v5, %v1071_v18  ;;  %v1284_v29 = vrot.slane %v627_v2, %v1071_v18 }
  0x31   : > { %v643_v17 = vmul.f32 %v1269_v4, %v1167_v24  ;;  %v406_v50 = vmul.f32 %v1084_v25, %v1075_v20  ;;  %v527_v54 = vadd.f32 %v525_v37, %v489_v39  ;;  %v653_v63 = vmul.f32 %v1276_v7, %v1169_v34 }
  0x32   : > { %v571_v55 = vsub.f32 %v559_v38, %v569_v46  ;;  %v609_v62 = vsub.f32 %v597_v3, %v607_v6  ;;  %v681_v8 = vmul.f32 %v1281_v23, %v1180_v44  ;;  %v691_v0 = vmul.f32 %v1284_v29, %v1182_v45 }
  0x33   : > { %v408_v12 = vmul.f32 %v1087_v26, %v1073_v19  ;;  %v444_v18 = vmul.f32 %v1090_v27, %v1079_v22  ;;  %v655_v25 = vsub.f32 %v643_v17, %v653_v63  ;;  %v446_v11 = vmul.f32 %v1093_v28, %v1077_v21 }
  0x34   : > { %v573_v5 = vadd.f32 %v571_v55, %v527_v54  ;;  %v490_v2 = vmul.f32 %v1100_v32, %v1097_v31  ;;  %v693_v37 = vsub.f32 %v681_v8, %v691_v0  ;;  %v492_v3 = vmul.f32 %v1116_v41, %v1095_v30 }
  0x35   : > { %v410_v38 = vadd.f32 %v408_v12, %v406_v50  ;;  %v528_v39 = vmul.f32 %v1124_v47, %v1120_v43  ;;  %v448_v46 = vadd.f32 %v446_v11, %v444_v18  ;;  %v530_v27 = vmul.f32 %v1127_v48, %v1118_v42  ;;  %v1383_v12 = vld [vmem:[#allocation2_spill] sm:$0xff] }
  0x36   : > { %v611_v26 = vadd.f32 %v609_v62, %v573_v5  ;;  %v574_v6 = vmul.f32 %v1141_v59, %v1137_v56  ;;  %v494_v28 = vadd.f32 %v492_v3, %v490_v2  ;;  %v576_v32 = vmul.f32 %v1144_v60, %v1131_v52 }
  0x37   : > { %v612_v17 = vmul.f32 %v1153_v9, %v1150_v1  ;;  %v614_v41 = vmul.f32 %v1156_v10, %v1146_v61  ;;  %v450_v50 = vadd.f32 %v448_v46, %v410_v38  ;;  %v532_v54 = vadd.f32 %v530_v27, %v528_v39 }
  0x38   : > { %v657_v47 = vadd.f32 %v655_v25, %v611_v26  ;;  %v658_v48 = vmul.f32 %v1172_v35, %v1169_v34  ;;  %v578_v55 = vadd.f32 %v576_v32, %v574_v6  ;;  %v660_v59 = vmul.f32 %v1178_v40, %v1167_v24 }
  0x39   : > { %v616_v62 = vadd.f32 %v614_v41, %v612_v17  ;;  %v496_v60 = vadd.f32 %v494_v28, %v450_v50  ;;  %v696_v9 = vmul.f32 %v1188_v51, %v1182_v45  ;;  %v407_v10 = vmul.f32 %v1201_v13, %v1075_v20  ;;  %v1384_v51 = vld [vmem:[#allocation3_spill] sm:$0xff]  ;;  %v1385_v20 = vld [vmem:[#allocation4_spill] sm:$0xff] }
  0x3a   : > { %v695_v63 = vadd.f32 %v693_v37, %v657_v47  ;;  %v698_v8 = vmul.f32 %v1191_v53, %v1180_v44  ;;  %v409_v0 = vmul.f32 %v1204_v14, %v1073_v19  ;;  %v445_v35 = vmul.f32 %v1207_v15, %v1079_v22 }
  0x3b   : > { %v447_v40 = vmul.f32 %v1383_v12, %v1077_v21  ;;  %v534_v18 = vadd.f32 %v532_v54, %v496_v60  ;;  %v662_v5 = vadd.f32 %v660_v59, %v658_v48  ;;  %v491_v25 = vmul.f32 %v1384_v51, %v1097_v31 }
  0x3c   : > { %705 = vst [vmem:[%s1231_s14 + $0x8] sm:$0xff] %v695_v63  ;;  %v493_v13 = vmul.f32 %v1385_v20, %v1095_v30  ;;  %v411_v11 = vadd.f32 %v409_v0, %v407_v10  ;;  %v529_v19 = vmul.f32 %v1240_v49, %v1120_v43  ;;  %v531_v22 = vmul.f32 %v1244_v57, %v1118_v42 }
  0x3d   : > { %v449_v53 = vadd.f32 %v447_v40, %v445_v35  ;;  %v580_v14 = vadd.f32 %v578_v55, %v534_v18  ;;  %v575_v15 = vmul.f32 %v1253_v58, %v1137_v56  ;;  %v577_v31 = vmul.f32 %v1259_v33, %v1131_v52 }
  0x3e   : > { %v495_v21 = vadd.f32 %v493_v13, %v491_v25  ;;  %v533_v37 = vadd.f32 %v531_v22, %v529_v19  ;;  %v613_v30 = vmul.f32 %v1256_v16, %v1150_v1  ;;  %v615_v43 = vmul.f32 %v1262_v36, %v1146_v61 }
  0x3f   : > { %v451_v2 = vadd.f32 %v449_v53, %v411_v11  ;;  %v618_v49 = vadd.f32 %v616_v62, %v580_v14  ;;  %v700_v38 = vadd.f32 %v698_v8, %v696_v9  ;;  %v579_v57 = vadd.f32 %v577_v31, %v575_v15 }
  0x40   : > { %v659_v3 = vmul.f32 %v1269_v4, %v1169_v34  ;;  %v661_v56 = vmul.f32 %v1276_v7, %v1167_v24  ;;  %v617_v1 = vadd.f32 %v615_v43, %v613_v30  ;;  %v697_v61 = vmul.f32 %v1281_v23, %v1182_v45 }
  0x41   : > { %v497_v42 = vadd.f32 %v495_v21, %v451_v2  ;;  %v664_v58 = vadd.f32 %v662_v5, %v618_v49  ;;  %v699_v16 = vmul.f32 %v1284_v29, %v1180_v44 }
  0x42   : > { %v663_v34 = vadd.f32 %v661_v56, %v659_v3 }
  0x43   : > { %v535_v52 = vadd.f32 %v533_v37, %v497_v42  ;;  %v702_v33 = vadd.f32 %v700_v38, %v664_v58  ;;  %v701_v24 = vadd.f32 %v699_v16, %v697_v61 }
  0x45   : > { %v581_v36 = vadd.f32 %v579_v57, %v535_v52  ;;  %706 = vst [vmem:[%s369_s17] sm:$0xff] %v702_v33 }
  0x47   : > { %v619_v4 = vadd.f32 %v617_v1, %v581_v36 }
  0x49   : > { %v665_v7 = vadd.f32 %v663_v34, %v619_v4 }
  0x4b   : > { %v703_v39 = vadd.f32 %v701_v24, %v665_v7 }
  0x4d   : > { %707 = vst [vmem:[%s369_s17 + $0x8] sm:$0xff] %v703_v39 }
  0x4e PF: > { %s16_s20 = sadd.s32 1, %s977_s20   ;;  %s1386_s18 = smov %s973_s19 }
  0x4f   : > { %p13_p5 = scmp.ge.s32.totalorder %s16_s20, 6   ;;  %s1387_s19 = smov %s1389_s21 }
  0x51   :  { %15 = sbr.rel (!%p13_p5) target bundleno = 2 (0x2), region = 101 }

// kernel: reverse.5
= control target key start
LH: loop header
LB: loop body
LE: loop exit
PB: predicated region body
PF: predicated region fallthrough
CT: control target
= control target key end

     0   :  { %v2_v0 = vlaneseq  ;;  %s2638_s0 = inlined_call_operand.vmem [shape: f32[2,8,8,8,8], index: 0, kind: input, shape index: {}]   ;;  %s2639_s1 = inlined_call_operand.vmem [shape: f32[2,8,8,8,8], index: 1, kind: output, shape index: {}]  }
   0x1   :  { %v290_v2 = vld [vmem:[%s2638_s0 + $0x10] sm:$0xff]  ;;  %v286_v3 = vld [vmem:[%s2638_s0] sm:$0xff]  ;;  %v292_v4 = vld [vmem:[%s2638_s0 + $0x18] sm:$0xff] }
   0x2   :  { %v3_v1 = vsub.s32 7, %v2_v0  ;;  %v288_v5 = vld [vmem:[%s2638_s0 + $0x8] sm:$0xff]  ;;  %v294_v7 = vld [vmem:[%s2638_s0 + $0x20] sm:$0xff]  ;;  %v300_v8 = vld [vmem:[%s2638_s0 + $0x38] sm:$0xff] }
   0x3   :  { %v296_v6 = vld [vmem:[%s2638_s0 + $0x28] sm:$0xff]  ;;  %v298_v9 = vld [vmem:[%s2638_s0 + $0x30] sm:$0xff]  ;;  %v302_v11 = vld [vmem:[%s2638_s0 + $0x40] sm:$0xff] }
   0x4   :  { %4 = vset.pattern.permute.xlu0 %v3_v1  ;;  %1859 = vset.pattern.permute.xlu1 %v3_v1  ;;  %v304_v10 = vld [vmem:[%s2638_s0 + $0x48] sm:$0xff]  ;;  %v308_v12 = vld [vmem:[%s2638_s0 + $0x58] sm:$0xff]  ;;  %v306_v13 = vld [vmem:[%s2638_s0 + $0x50] sm:$0xff] }
   0x5   :  { %558 = vperm.xlu1 %1859, %v290_v2   ;;  %546 = vperm.xlu0 %4, %v286_v3   ;;  %v312_v14 = vld [vmem:[%s2638_s0 + $0x68] sm:$0xff]  ;;  %v310_v15 = vld [vmem:[%s2638_s0 + $0x60] sm:$0xff]  ;;  %v316_v16 = vld [vmem:[%s2638_s0 + $0x78] sm:$0xff] }
   0x6   :  { %v314_v17 = vld [vmem:[%s2638_s0 + $0x70] sm:$0xff]  ;;  %v320_v18 = vld [vmem:[%s2638_s0 + $0x88] sm:$0xff]  ;;  %v318_v19 = vld [vmem:[%s2638_s0 + $0x80] sm:$0xff] }
   0x7   :  { %v324_v20 = vld [vmem:[%s2638_s0 + $0x98] sm:$0xff]  ;;  %v322_v21 = vld [vmem:[%s2638_s0 + $0x90] sm:$0xff]  ;;  %v328_v22 = vld [vmem:[%s2638_s0 + $0xa8] sm:$0xff] }
   0x8   :  { %v326_v23 = vld [vmem:[%s2638_s0 + $0xa0] sm:$0xff]  ;;  %v332_v24 = vld [vmem:[%s2638_s0 + $0xb8] sm:$0xff]  ;;  %v330_v25 = vld [vmem:[%s2638_s0 + $0xb0] sm:$0xff] }
   0x9   :  { %564 = vperm.xlu1 %1859, %v292_v4   ;;  %552 = vperm.xlu0 %4, %v288_v5   ;;  %v336_v26 = vld [vmem:[%s2638_s0 + $0xc8] sm:$0xff]  ;;  %v334_v27 = vld [vmem:[%s2638_s0 + $0xc0] sm:$0xff]  ;;  %v340_v28 = vld [vmem:[%s2638_s0 + $0xd8] sm:$0xff] }
   0xa   :  { %v338_v29 = vld [vmem:[%s2638_s0 + $0xd0] sm:$0xff]  ;;  %v344_v30 = vld [vmem:[%s2638_s0 + $0xe8] sm:$0xff]  ;;  %v342_v31 = vld [vmem:[%s2638_s0 + $0xe0] sm:$0xff] }
   0xb   :  { %v348_v32 = vld [vmem:[%s2638_s0 + $0xf8] sm:$0xff]  ;;  %v346_v33 = vld [vmem:[%s2638_s0 + $0xf0] sm:$0xff]  ;;  %v352_v34 = vld [vmem:[%s2638_s0 + $0x108] sm:$0xff] }
   0xc   :  { %v350_v35 = vld [vmem:[%s2638_s0 + $0x100] sm:$0xff]  ;;  %v356_v36 = vld [vmem:[%s2638_s0 + $0x118] sm:$0xff]  ;;  %v354_v37 = vld [vmem:[%s2638_s0 + $0x110] sm:$0xff] }
   0xd   :  { %576 = vperm.xlu1 %1859, %v296_v6   ;;  %570 = vperm.xlu0 %4, %v294_v7   ;;  %v360_v38 = vld [vmem:[%s2638_s0 + $0x128] sm:$0xff]  ;;  %v358_v39 = vld [vmem:[%s2638_s0 + $0x120] sm:$0xff]  ;;  %v364_v40 = vld [vmem:[%s2638_s0 + $0x138] sm:$0xff] }
   0xe   :  { %v362_v41 = vld [vmem:[%s2638_s0 + $0x130] sm:$0xff]  ;;  %v368_v42 = vld [vmem:[%s2638_s0 + $0x148] sm:$0xff]  ;;  %v366_v43 = vld [vmem:[%s2638_s0 + $0x140] sm:$0xff] }
   0xf   :  { %v372_v44 = vld [vmem:[%s2638_s0 + $0x158] sm:$0xff]  ;;  %v370_v45 = vld [vmem:[%s2638_s0 + $0x150] sm:$0xff]  ;;  %v376_v46 = vld [vmem:[%s2638_s0 + $0x168] sm:$0xff] }
  0x10   :  { %v374_v47 = vld [vmem:[%s2638_s0 + $0x160] sm:$0xff]  ;;  %v380_v48 = vld [vmem:[%s2638_s0 + $0x178] sm:$0xff]  ;;  %v378_v49 = vld [vmem:[%s2638_s0 + $0x170] sm:$0xff] }
  0x11   :  { %588 = vperm.xlu1 %1859, %v300_v8   ;;  %582 = vperm.xlu0 %4, %v298_v9   ;;  %v384_v50 = vld [vmem:[%s2638_s0 + $0x188] sm:$0xff]  ;;  %v382_v51 = vld [vmem:[%s2638_s0 + $0x180] sm:$0xff]  ;;  %v388_v52 = vld [vmem:[%s2638_s0 + $0x198] sm:$0xff] }
  0x12   :  { %v386_v53 = vld [vmem:[%s2638_s0 + $0x190] sm:$0xff]  ;;  %v392_v54 = vld [vmem:[%s2638_s0 + $0x1a8] sm:$0xff]  ;;  %v390_v55 = vld [vmem:[%s2638_s0 + $0x1a0] sm:$0xff] }
  0x13   :  { %v396_v56 = vld [vmem:[%s2638_s0 + $0x1b8] sm:$0xff]  ;;  %v394_v57 = vld [vmem:[%s2638_s0 + $0x1b0] sm:$0xff]  ;;  %v400_v58 = vld [vmem:[%s2638_s0 + $0x1c8] sm:$0xff] }
  0x14   :  { %v398_v59 = vld [vmem:[%s2638_s0 + $0x1c0] sm:$0xff]  ;;  %v404_v60 = vld [vmem:[%s2638_s0 + $0x1d8] sm:$0xff]  ;;  %v402_v61 = vld [vmem:[%s2638_s0 + $0x1d0] sm:$0xff] }
  0x15   :  { %600 = vperm.xlu1 %1859, %v304_v10   ;;  %594 = vperm.xlu0 %4, %v302_v11   ;;  %v408_v62 = vld [vmem:[%s2638_s0 + $0x1e8] sm:$0xff]  ;;  %v406_v63 = vld [vmem:[%s2638_s0 + $0x1e0] sm:$0xff]  ;;  %v412_v0 = vld [vmem:[%s2638_s0 + $0x1f8] sm:$0xff] }
  0x16   :  { %v410_v1 = vld [vmem:[%s2638_s0 + $0x1f0] sm:$0xff]  ;;  %v416_v2 = vld [vmem:[%s2638_s0 + $0x208] sm:$0xff]  ;;  %v414_v3 = vld [vmem:[%s2638_s0 + $0x200] sm:$0xff] }
  0x17   :  { %v420_v6 = vld [vmem:[%s2638_s0 + $0x218] sm:$0xff]  ;;  %v418_v7 = vld [vmem:[%s2638_s0 + $0x210] sm:$0xff]  ;;  %v424_v10 = vld [vmem:[%s2638_s0 + $0x228] sm:$0xff] }
  0x18   :  { %v422_v11 = vld [vmem:[%s2638_s0 + $0x220] sm:$0xff] }
  0x19   :  { %612 = vperm.xlu1 %1859, %v308_v12   ;;  %606 = vperm.xlu0 %4, %v306_v13  }
  0x1d   :  { %624 = vperm.xlu1 %1859, %v312_v14   ;;  %618 = vperm.xlu0 %4, %v310_v15   ;;  %v428_v14 = vld [vmem:[%s2638_s0 + $0x238] sm:$0xff]  ;;  %v426_v15 = vld [vmem:[%s2638_s0 + $0x230] sm:$0xff] }
  0x21   :  { %636 = vperm.xlu1 %1859, %v316_v16   ;;  %630 = vperm.xlu0 %4, %v314_v17  }
  0x25   :  { %648 = vperm.xlu1 %1859, %v320_v18   ;;  %642 = vperm.xlu0 %4, %v318_v19   ;;  %v432_v18 = vld [vmem:[%s2638_s0 + $0x248] sm:$0xff]  ;;  %v430_v19 = vld [vmem:[%s2638_s0 + $0x240] sm:$0xff] }
  0x29   :  { %660 = vperm.xlu1 %1859, %v324_v20   ;;  %654 = vperm.xlu0 %4, %v322_v21  }
  0x2d   :  { %672 = vperm.xlu1 %1859, %v328_v22   ;;  %666 = vperm.xlu0 %4, %v326_v23   ;;  %v436_v22 = vld [vmem:[%s2638_s0 + $0x258] sm:$0xff]  ;;  %v434_v23 = vld [vmem:[%s2638_s0 + $0x250] sm:$0xff] }
  0x31   :  { %684 = vperm.xlu1 %1859, %v332_v24   ;;  %678 = vperm.xlu0 %4, %v330_v25  }
  0x35   :  { %696 = vperm.xlu1 %1859, %v336_v26   ;;  %690 = vperm.xlu0 %4, %v334_v27   ;;  %v440_v26 = vld [vmem:[%s2638_s0 + $0x268] sm:$0xff]  ;;  %v438_v27 = vld [vmem:[%s2638_s0 + $0x260] sm:$0xff] }
  0x39   :  { %708 = vperm.xlu1 %1859, %v340_v28   ;;  %702 = vperm.xlu0 %4, %v338_v29  }
  0x3d   :  { %720 = vperm.xlu1 %1859, %v344_v30   ;;  %714 = vperm.xlu0 %4, %v342_v31   ;;  %v444_v30 = vld [vmem:[%s2638_s0 + $0x278] sm:$0xff]  ;;  %v442_v31 = vld [vmem:[%s2638_s0 + $0x270] sm:$0xff] }
  0x41   :  { %732 = vperm.xlu1 %1859, %v348_v32   ;;  %726 = vperm.xlu0 %4, %v346_v33  }
  0x45   :  { %744 = vperm.xlu1 %1859, %v352_v34   ;;  %738 = vperm.xlu0 %4, %v350_v35   ;;  %v448_v34 = vld [vmem:[%s2638_s0 + $0x288] sm:$0xff]  ;;  %v446_v35 = vld [vmem:[%s2638_s0 + $0x280] sm:$0xff] }
  0x49   :  { %756 = vperm.xlu1 %1859, %v356_v36   ;;  %750 = vperm.xlu0 %4, %v354_v37  }
  0x4d   :  { %768 = vperm.xlu1 %1859, %v360_v38   ;;  %762 = vperm.xlu0 %4, %v358_v39   ;;  %v452_v38 = vld [vmem:[%s2638_s0 + $0x298] sm:$0xff]  ;;  %v450_v39 = vld [vmem:[%s2638_s0 + $0x290] sm:$0xff] }
  0x51   :  { %780 = vperm.xlu1 %1859, %v364_v40   ;;  %774 = vperm.xlu0 %4, %v362_v41  }
  0x55   :  { %792 = vperm.xlu1 %1859, %v368_v42   ;;  %786 = vperm.xlu0 %4, %v366_v43   ;;  %v456_v42 = vld [vmem:[%s2638_s0 + $0x2a8] sm:$0xff]  ;;  %v454_v43 = vld [vmem:[%s2638_s0 + $0x2a0] sm:$0xff] }
  0x59   :  { %804 = vperm.xlu1 %1859, %v372_v44   ;;  %798 = vperm.xlu0 %4, %v370_v45  }
  0x5d   :  { %816 = vperm.xlu1 %1859, %v376_v46   ;;  %810 = vperm.xlu0 %4, %v374_v47   ;;  %v460_v46 = vld [vmem:[%s2638_s0 + $0x2b8] sm:$0xff]  ;;  %v458_v47 = vld [vmem:[%s2638_s0 + $0x2b0] sm:$0xff] }
  0x61   :  { %828 = vperm.xlu1 %1859, %v380_v48   ;;  %822 = vperm.xlu0 %4, %v378_v49  }
  0x65   :  { %840 = vperm.xlu1 %1859, %v384_v50   ;;  %834 = vperm.xlu0 %4, %v382_v51   ;;  %v464_v50 = vld [vmem:[%s2638_s0 + $0x2c8] sm:$0xff]  ;;  %v462_v51 = vld [vmem:[%s2638_s0 + $0x2c0] sm:$0xff] }
  0x69   :  { %852 = vperm.xlu1 %1859, %v388_v52   ;;  %846 = vperm.xlu0 %4, %v386_v53  }
  0x6d   :  { %864 = vperm.xlu1 %1859, %v392_v54   ;;  %858 = vperm.xlu0 %4, %v390_v55   ;;  %v468_v54 = vld [vmem:[%s2638_s0 + $0x2d8] sm:$0xff]  ;;  %v466_v55 = vld [vmem:[%s2638_s0 + $0x2d0] sm:$0xff] }
  0x71   :  { %876 = vperm.xlu1 %1859, %v396_v56   ;;  %870 = vperm.xlu0 %4, %v394_v57  }
  0x75   :  { %888 = vperm.xlu1 %1859, %v400_v58   ;;  %882 = vperm.xlu0 %4, %v398_v59   ;;  %v472_v58 = vld [vmem:[%s2638_s0 + $0x2e8] sm:$0xff]  ;;  %v470_v59 = vld [vmem:[%s2638_s0 + $0x2e0] sm:$0xff] }
  0x79   :  { %900 = vperm.xlu1 %1859, %v404_v60   ;;  %894 = vperm.xlu0 %4, %v402_v61  }
  0x7d   :  { %912 = vperm.xlu1 %1859, %v408_v62   ;;  %906 = vperm.xlu0 %4, %v406_v63   ;;  %v476_v62 = vld [vmem:[%s2638_s0 + $0x2f8] sm:$0xff]  ;;  %v474_v63 = vld [vmem:[%s2638_s0 + $0x2f0] sm:$0xff] }
  0x81   :  { %924 = vperm.xlu1 %1859, %v412_v0   ;;  %918 = vperm.xlu0 %4, %v410_v1  }
  0x84   :  { %v559_v4 = vpop.permute.xlu1 %558  ;;  %v547_v5 = vpop.permute.xlu0 %546 }
  0x85   :  { %1597 = vst [vmem:[%s2639_s1 + $0x10] sm:$0xff] %v559_v4  ;;  %1593 = vst [vmem:[%s2639_s1] sm:$0xff] %v547_v5  ;;  %936 = vperm.xlu1 %1859, %v416_v2   ;;  %930 = vperm.xlu0 %4, %v414_v3   ;;  %v480_v2 = vld [vmem:[%s2638_s0 + $0x308] sm:$0xff]  ;;  %v478_v3 = vld [vmem:[%s2638_s0 + $0x300] sm:$0xff] }
  0x88   :  { %v565_v8 = vpop.permute.xlu1 %564  ;;  %v553_v9 = vpop.permute.xlu0 %552 }
  0x89   :  { %1599 = vst [vmem:[%s2639_s1 + $0x18] sm:$0xff] %v565_v8  ;;  %1595 = vst [vmem:[%s2639_s1 + $0x8] sm:$0xff] %v553_v9  ;;  %948 = vperm.xlu1 %1859, %v420_v6   ;;  %942 = vperm.xlu0 %4, %v418_v7   ;;  %v484_v6 = vld [vmem:[%s2638_s0 + $0x318] sm:$0xff]  ;;  %v482_v7 = vld [vmem:[%s2638_s0 + $0x310] sm:$0xff] }
  0x8c   :  { %v577_v12 = vpop.permute.xlu1 %576  ;;  %v571_v13 = vpop.permute.xlu0 %570 }
  0x8d   :  { %1603 = vst [vmem:[%s2639_s1 + $0x28] sm:$0xff] %v577_v12  ;;  %1601 = vst [vmem:[%s2639_s1 + $0x20] sm:$0xff] %v571_v13  ;;  %960 = vperm.xlu1 %1859, %v424_v10   ;;  %954 = vperm.xlu0 %4, %v422_v11   ;;  %v488_v10 = vld [vmem:[%s2638_s0 + $0x328] sm:$0xff]  ;;  %v486_v11 = vld [vmem:[%s2638_s0 + $0x320] sm:$0xff] }
  0x90   :  { %v589_v16 = vpop.permute.xlu1 %588  ;;  %v583_v17 = vpop.permute.xlu0 %582 }
  0x91   :  { %1607 = vst [vmem:[%s2639_s1 + $0x38] sm:$0xff] %v589_v16  ;;  %1605 = vst [vmem:[%s2639_s1 + $0x30] sm:$0xff] %v583_v17  ;;  %972 = vperm.xlu1 %1859, %v428_v14   ;;  %966 = vperm.xlu0 %4, %v426_v15   ;;  %v492_v14 = vld [vmem:[%s2638_s0 + $0x338] sm:$0xff]  ;;  %v490_v15 = vld [vmem:[%s2638_s0 + $0x330] sm:$0xff] }
  0x94   :  { %v601_v20 = vpop.permute.xlu1 %600  ;;  %v595_v21 = vpop.permute.xlu0 %594 }
  0x95   :  { %1611 = vst [vmem:[%s2639_s1 + $0x48] sm:$0xff] %v601_v20  ;;  %1609 = vst [vmem:[%s2639_s1 + $0x40] sm:$0xff] %v595_v21  ;;  %984 = vperm.xlu1 %1859, %v432_v18   ;;  %978 = vperm.xlu0 %4, %v430_v19   ;;  %v496_v18 = vld [vmem:[%s2638_s0 + $0x348] sm:$0xff]  ;;  %v494_v19 = vld [vmem:[%s2638_s0 + $0x340] sm:$0xff] }
  0x98   :  { %v613_v24 = vpop.permute.xlu1 %612  ;;  %v607_v25 = vpop.permute.xlu0 %606 }
  0x99   :  { %1615 = vst [vmem:[%s2639_s1 + $0x58] sm:$0xff] %v613_v24  ;;  %1613 = vst [vmem:[%s2639_s1 + $0x50] sm:$0xff] %v607_v25  ;;  %996 = vperm.xlu1 %1859, %v436_v22   ;;  %990 = vperm.xlu0 %4, %v434_v23   ;;  %v500_v22 = vld [vmem:[%s2638_s0 + $0x358] sm:$0xff]  ;;  %v498_v23 = vld [vmem:[%s2638_s0 + $0x350] sm:$0xff] }
  0x9c   :  { %v625_v28 = vpop.permute.xlu1 %624  ;;  %v619_v29 = vpop.permute.xlu0 %618 }
  0x9d   :  { %1619 = vst [vmem:[%s2639_s1 + $0x68] sm:$0xff] %v625_v28  ;;  %1617 = vst [vmem:[%s2639_s1 + $0x60] sm:$0xff] %v619_v29  ;;  %1008 = vperm.xlu1 %1859, %v440_v26   ;;  %1002 = vperm.xlu0 %4, %v438_v27   ;;  %v504_v26 = vld [vmem:[%s2638_s0 + $0x368] sm:$0xff]  ;;  %v502_v27 = vld [vmem:[%s2638_s0 + $0x360] sm:$0xff] }
  0xa0   :  { %v637_v32 = vpop.permute.xlu1 %636  ;;  %v631_v33 = vpop.permute.xlu0 %630 }
  0xa1   :  { %1623 = vst [vmem:[%s2639_s1 + $0x78] sm:$0xff] %v637_v32  ;;  %1621 = vst [vmem:[%s2639_s1 + $0x70] sm:$0xff] %v631_v33  ;;  %1020 = vperm.xlu1 %1859, %v444_v30   ;;  %1014 = vperm.xlu0 %4, %v442_v31   ;;  %v508_v30 = vld [vmem:[%s2638_s0 + $0x378] sm:$0xff]  ;;  %v506_v31 = vld [vmem:[%s2638_s0 + $0x370] sm:$0xff] }
  0xa4   :  { %v649_v36 = vpop.permute.xlu1 %648  ;;  %v643_v37 = vpop.permute.xlu0 %642 }
  0xa5   :  { %1627 = vst [vmem:[%s2639_s1 + $0x88] sm:$0xff] %v649_v36  ;;  %1625 = vst [vmem:[%s2639_s1 + $0x80] sm:$0xff] %v643_v37  ;;  %1032 = vperm.xlu1 %1859, %v448_v34   ;;  %1026 = vperm.xlu0 %4, %v446_v35   ;;  %v512_v34 = vld [vmem:[%s2638_s0 + $0x388] sm:$0xff]  ;;  %v510_v35 = vld [vmem:[%s2638_s0 + $0x380] sm:$0xff] }
  0xa8   :  { %v661_v40 = vpop.permute.xlu1 %660  ;;  %v655_v41 = vpop.permute.xlu0 %654 }
  0xa9   :  { %1631 = vst [vmem:[%s2639_s1 + $0x98] sm:$0xff] %v661_v40  ;;  %1629 = vst [vmem:[%s2639_s1 + $0x90] sm:$0xff] %v655_v41  ;;  %1044 = vperm.xlu1 %1859, %v452_v38   ;;  %1038 = vperm.xlu0 %4, %v450_v39   ;;  %v516_v38 = vld [vmem:[%s2638_s0 + $0x398] sm:$0xff]  ;;  %v514_v39 = vld [vmem:[%s2638_s0 + $0x390] sm:$0xff] }
  0xac   :  { %v673_v44 = vpop.permute.xlu1 %672  ;;  %v667_v45 = vpop.permute.xlu0 %666 }
  0xad   :  { %1635 = vst [vmem:[%s2639_s1 + $0xa8] sm:$0xff] %v673_v44  ;;  %1633 = vst [vmem:[%s2639_s1 + $0xa0] sm:$0xff] %v667_v45  ;;  %1056 = vperm.xlu1 %1859, %v456_v42   ;;  %1050 = vperm.xlu0 %4, %v454_v43   ;;  %v520_v42 = vld [vmem:[%s2638_s0 + $0x3a8] sm:$0xff]  ;;  %v518_v43 = vld [vmem:[%s2638_s0 + $0x3a0] sm:$0xff] }
  0xb0   :  { %v685_v48 = vpop.permute.xlu1 %684  ;;  %v679_v49 = vpop.permute.xlu0 %678 }
  0xb1   :  { %1639 = vst [vmem:[%s2639_s1 + $0xb8] sm:$0xff] %v685_v48  ;;  %1637 = vst [vmem:[%s2639_s1 + $0xb0] sm:$0xff] %v679_v49  ;;  %1068 = vperm.xlu1 %1859, %v460_v46   ;;  %1062 = vperm.xlu0 %4, %v458_v47   ;;  %v524_v46 = vld [vmem:[%s2638_s0 + $0x3b8] sm:$0xff]  ;;  %v522_v47 = vld [vmem:[%s2638_s0 + $0x3b0] sm:$0xff] }
  0xb4   :  { %v697_v52 = vpop.permute.xlu1 %696  ;;  %v691_v53 = vpop.permute.xlu0 %690 }
  0xb5   :  { %1643 = vst [vmem:[%s2639_s1 + $0xc8] sm:$0xff] %v697_v52  ;;  %1641 = vst [vmem:[%s2639_s1 + $0xc0] sm:$0xff] %v691_v53  ;;  %1080 = vperm.xlu1 %1859, %v464_v50   ;;  %1074 = vperm.xlu0 %4, %v462_v51   ;;  %v528_v50 = vld [vmem:[%s2638_s0 + $0x3c8] sm:$0xff]  ;;  %v526_v51 = vld [vmem:[%s2638_s0 + $0x3c0] sm:$0xff] }
  0xb8   :  { %v709_v56 = vpop.permute.xlu1 %708  ;;  %v703_v57 = vpop.permute.xlu0 %702 }
  0xb9   :  { %1647 = vst [vmem:[%s2639_s1 + $0xd8] sm:$0xff] %v709_v56  ;;  %1645 = vst [vmem:[%s2639_s1 + $0xd0] sm:$0xff] %v703_v57  ;;  %1092 = vperm.xlu1 %1859, %v468_v54   ;;  %1086 = vperm.xlu0 %4, %v466_v55   ;;  %v532_v54 = vld [vmem:[%s2638_s0 + $0x3d8] sm:$0xff]  ;;  %v530_v55 = vld [vmem:[%s2638_s0 + $0x3d0] sm:$0xff] }
  0xbc   :  { %v721_v60 = vpop.permute.xlu1 %720  ;;  %v715_v61 = vpop.permute.xlu0 %714 }
  0xbd   :  { %1651 = vst [vmem:[%s2639_s1 + $0xe8] sm:$0xff] %v721_v60  ;;  %1649 = vst [vmem:[%s2639_s1 + $0xe0] sm:$0xff] %v715_v61  ;;  %1104 = vperm.xlu1 %1859, %v472_v58   ;;  %1098 = vperm.xlu0 %4, %v470_v59   ;;  %v536_v58 = vld [vmem:[%s2638_s0 + $0x3e8] sm:$0xff]  ;;  %v534_v59 = vld [vmem:[%s2638_s0 + $0x3e0] sm:$0xff] }
  0xc0   :  { %v733_v0 = vpop.permute.xlu1 %732  ;;  %v727_v1 = vpop.permute.xlu0 %726 }
  0xc1   :  { %1655 = vst [vmem:[%s2639_s1 + $0xf8] sm:$0xff] %v733_v0  ;;  %1653 = vst [vmem:[%s2639_s1 + $0xf0] sm:$0xff] %v727_v1  ;;  %1116 = vperm.xlu1 %1859, %v476_v62   ;;  %1110 = vperm.xlu0 %4, %v474_v63   ;;  %v540_v62 = vld [vmem:[%s2638_s0 + $0x3f8] sm:$0xff]  ;;  %v538_v63 = vld [vmem:[%s2638_s0 + $0x3f0] sm:$0xff] }
  0xc4   :  { %v745_v4 = vpop.permute.xlu1 %744  ;;  %v739_v5 = vpop.permute.xlu0 %738 }
  0xc5   :  { %1659 = vst [vmem:[%s2639_s1 + $0x108] sm:$0xff] %v745_v4  ;;  %1657 = vst [vmem:[%s2639_s1 + $0x100] sm:$0xff] %v739_v5  ;;  %1128 = vperm.xlu1 %1859, %v480_v2   ;;  %1122 = vperm.xlu0 %4, %v478_v3  }
  0xc8   :  { %v757_v8 = vpop.permute.xlu1 %756  ;;  %v751_v9 = vpop.permute.xlu0 %750 }
  0xc9   :  { %1663 = vst [vmem:[%s2639_s1 + $0x118] sm:$0xff] %v757_v8  ;;  %1661 = vst [vmem:[%s2639_s1 + $0x110] sm:$0xff] %v751_v9  ;;  %1140 = vperm.xlu1 %1859, %v484_v6   ;;  %1134 = vperm.xlu0 %4, %v482_v7  }
  0xcc   :  { %v769_v12 = vpop.permute.xlu1 %768  ;;  %v763_v13 = vpop.permute.xlu0 %762 }
  0xcd   :  { %1667 = vst [vmem:[%s2639_s1 + $0x128] sm:$0xff] %v769_v12  ;;  %1665 = vst [vmem:[%s2639_s1 + $0x120] sm:$0xff] %v763_v13  ;;  %1152 = vperm.xlu1 %1859, %v488_v10   ;;  %1146 = vperm.xlu0 %4, %v486_v11  }
  0xd0   :  { %v781_v16 = vpop.permute.xlu1 %780  ;;  %v775_v17 = vpop.permute.xlu0 %774 }
  0xd1   :  { %1671 = vst [vmem:[%s2639_s1 + $0x138] sm:$0xff] %v781_v16  ;;  %1669 = vst [vmem:[%s2639_s1 + $0x130] sm:$0xff] %v775_v17  ;;  %1164 = vperm.xlu1 %1859, %v492_v14   ;;  %1158 = vperm.xlu0 %4, %v490_v15  }
  0xd4   :  { %v793_v20 = vpop.permute.xlu1 %792  ;;  %v787_v21 = vpop.permute.xlu0 %786 }
  0xd5   :  { %1675 = vst [vmem:[%s2639_s1 + $0x148] sm:$0xff] %v793_v20  ;;  %1673 = vst [vmem:[%s2639_s1 + $0x140] sm:$0xff] %v787_v21  ;;  %1176 = vperm.xlu1 %1859, %v496_v18   ;;  %1170 = vperm.xlu0 %4, %v494_v19  }
  0xd8   :  { %v805_v24 = vpop.permute.xlu1 %804  ;;  %v799_v25 = vpop.permute.xlu0 %798 }
  0xd9   :  { %1679 = vst [vmem:[%s2639_s1 + $0x158] sm:$0xff] %v805_v24  ;;  %1677 = vst [vmem:[%s2639_s1 + $0x150] sm:$0xff] %v799_v25  ;;  %1188 = vperm.xlu1 %1859, %v500_v22   ;;  %1182 = vperm.xlu0 %4, %v498_v23  }
  0xdc   :  { %v817_v28 = vpop.permute.xlu1 %816  ;;  %v811_v29 = vpop.permute.xlu0 %810 }
  0xdd   :  { %1683 = vst [vmem:[%s2639_s1 + $0x168] sm:$0xff] %v817_v28  ;;  %1681 = vst [vmem:[%s2639_s1 + $0x160] sm:$0xff] %v811_v29  ;;  %1200 = vperm.xlu1 %1859, %v504_v26   ;;  %1194 = vperm.xlu0 %4, %v502_v27  }
  0xe0   :  { %v829_v32 = vpop.permute.xlu1 %828  ;;  %v823_v33 = vpop.permute.xlu0 %822 }
  0xe1   :  { %1687 = vst [vmem:[%s2639_s1 + $0x178] sm:$0xff] %v829_v32  ;;  %1685 = vst [vmem:[%s2639_s1 + $0x170] sm:$0xff] %v823_v33  ;;  %1212 = vperm.xlu1 %1859, %v508_v30   ;;  %1206 = vperm.xlu0 %4, %v506_v31  }
  0xe4   :  { %v841_v36 = vpop.permute.xlu1 %840  ;;  %v835_v37 = vpop.permute.xlu0 %834 }
  0xe5   :  { %1691 = vst [vmem:[%s2639_s1 + $0x188] sm:$0xff] %v841_v36  ;;  %1689 = vst [vmem:[%s2639_s1 + $0x180] sm:$0xff] %v835_v37  ;;  %1224 = vperm.xlu1 %1859, %v512_v34   ;;  %1218 = vperm.xlu0 %4, %v510_v35  }
  0xe8   :  { %v853_v40 = vpop.permute.xlu1 %852  ;;  %v847_v41 = vpop.permute.xlu0 %846 }
  0xe9   :  { %1695 = vst [vmem:[%s2639_s1 + $0x198] sm:$0xff] %v853_v40  ;;  %1693 = vst [vmem:[%s2639_s1 + $0x190] sm:$0xff] %v847_v41  ;;  %1236 = vperm.xlu1 %1859, %v516_v38   ;;  %1230 = vperm.xlu0 %4, %v514_v39  }
  0xec   :  { %v865_v44 = vpop.permute.xlu1 %864  ;;  %v859_v45 = vpop.permute.xlu0 %858 }
  0xed   :  { %1699 = vst [vmem:[%s2639_s1 + $0x1a8] sm:$0xff] %v865_v44  ;;  %1697 = vst [vmem:[%s2639_s1 + $0x1a0] sm:$0xff] %v859_v45  ;;  %1248 = vperm.xlu1 %1859, %v520_v42   ;;  %1242 = vperm.xlu0 %4, %v518_v43  }
  0xf0   :  { %v877_v48 = vpop.permute.xlu1 %876  ;;  %v871_v49 = vpop.permute.xlu0 %870 }
  0xf1   :  { %1703 = vst [vmem:[%s2639_s1 + $0x1b8] sm:$0xff] %v877_v48  ;;  %1701 = vst [vmem:[%s2639_s1 + $0x1b0] sm:$0xff] %v871_v49  ;;  %1260 = vperm.xlu1 %1859, %v524_v46   ;;  %1254 = vperm.xlu0 %4, %v522_v47  }
  0xf4   :  { %v889_v52 = vpop.permute.xlu1 %888  ;;  %v883_v53 = vpop.permute.xlu0 %882 }
  0xf5   :  { %1707 = vst [vmem:[%s2639_s1 + $0x1c8] sm:$0xff] %v889_v52  ;;  %1705 = vst [vmem:[%s2639_s1 + $0x1c0] sm:$0xff] %v883_v53  ;;  %1272 = vperm.xlu1 %1859, %v528_v50   ;;  %1266 = vperm.xlu0 %4, %v526_v51  }
  0xf8   :  { %v901_v56 = vpop.permute.xlu1 %900  ;;  %v895_v57 = vpop.permute.xlu0 %894 }
  0xf9   :  { %1711 = vst [vmem:[%s2639_s1 + $0x1d8] sm:$0xff] %v901_v56  ;;  %1709 = vst [vmem:[%s2639_s1 + $0x1d0] sm:$0xff] %v895_v57  ;;  %1284 = vperm.xlu1 %1859, %v532_v54   ;;  %1278 = vperm.xlu0 %4, %v530_v55  }
  0xfc   :  { %v913_v60 = vpop.permute.xlu1 %912  ;;  %v907_v61 = vpop.permute.xlu0 %906 }
  0xfd   :  { %1715 = vst [vmem:[%s2639_s1 + $0x1e8] sm:$0xff] %v913_v60  ;;  %1713 = vst [vmem:[%s2639_s1 + $0x1e0] sm:$0xff] %v907_v61  ;;  %1296 = vperm.xlu1 %1859, %v536_v58   ;;  %1290 = vperm.xlu0 %4, %v534_v59  }
 0x100   :  { %v925_v0 = vpop.permute.xlu1 %924  ;;  %v919_v1 = vpop.permute.xlu0 %918 }
 0x101   :  { %1719 = vst [vmem:[%s2639_s1 + $0x1f8] sm:$0xff] %v925_v0  ;;  %1717 = vst [vmem:[%s2639_s1 + $0x1f0] sm:$0xff] %v919_v1  ;;  %1308 = vperm.xlu1 %1859, %v540_v62   ;;  %1302 = vperm.xlu0 %4, %v538_v63  }
 0x104   :  { %v937_v2 = vpop.permute.xlu1 %936  ;;  %v931_v3 = vpop.permute.xlu0 %930 }
 0x105   :  { %1723 = vst [vmem:[%s2639_s1 + $0x208] sm:$0xff] %v937_v2  ;;  %1721 = vst [vmem:[%s2639_s1 + $0x200] sm:$0xff] %v931_v3 }
 0x108   :  { %v949_v4 = vpop.permute.xlu1 %948  ;;  %v943_v5 = vpop.permute.xlu0 %942 }
 0x109   :  { %1727 = vst [vmem:[%s2639_s1 + $0x218] sm:$0xff] %v949_v4  ;;  %1725 = vst [vmem:[%s2639_s1 + $0x210] sm:$0xff] %v943_v5 }
 0x10c   :  { %v961_v6 = vpop.permute.xlu1 %960  ;;  %v955_v7 = vpop.permute.xlu0 %954 }
 0x10d   :  { %1731 = vst [vmem:[%s2639_s1 + $0x228] sm:$0xff] %v961_v6  ;;  %1729 = vst [vmem:[%s2639_s1 + $0x220] sm:$0xff] %v955_v7 }
 0x110   :  { %v973_v8 = vpop.permute.xlu1 %972  ;;  %v967_v9 = vpop.permute.xlu0 %966 }
 0x111   :  { %1735 = vst [vmem:[%s2639_s1 + $0x238] sm:$0xff] %v973_v8  ;;  %1733 = vst [vmem:[%s2639_s1 + $0x230] sm:$0xff] %v967_v9 }
 0x114   :  { %v985_v10 = vpop.permute.xlu1 %984  ;;  %v979_v11 = vpop.permute.xlu0 %978 }
 0x115   :  { %1739 = vst [vmem:[%s2639_s1 + $0x248] sm:$0xff] %v985_v10  ;;  %1737 = vst [vmem:[%s2639_s1 + $0x240] sm:$0xff] %v979_v11 }
 0x118   :  { %v997_v12 = vpop.permute.xlu1 %996  ;;  %v991_v13 = vpop.permute.xlu0 %990 }
 0x119   :  { %1743 = vst [vmem:[%s2639_s1 + $0x258] sm:$0xff] %v997_v12  ;;  %1741 = vst [vmem:[%s2639_s1 + $0x250] sm:$0xff] %v991_v13 }
 0x11c   :  { %v1009_v14 = vpop.permute.xlu1 %1008  ;;  %v1003_v15 = vpop.permute.xlu0 %1002 }
 0x11d   :  { %1747 = vst [vmem:[%s2639_s1 + $0x268] sm:$0xff] %v1009_v14  ;;  %1745 = vst [vmem:[%s2639_s1 + $0x260] sm:$0xff] %v1003_v15 }
 0x120   :  { %v1021_v16 = vpop.permute.xlu1 %1020  ;;  %v1015_v17 = vpop.permute.xlu0 %1014 }
 0x121   :  { %1751 = vst [vmem:[%s2639_s1 + $0x278] sm:$0xff] %v1021_v16  ;;  %1749 = vst [vmem:[%s2639_s1 + $0x270] sm:$0xff] %v1015_v17 }
 0x124   :  { %v1033_v18 = vpop.permute.xlu1 %1032  ;;  %v1027_v19 = vpop.permute.xlu0 %1026 }
 0x125   :  { %1755 = vst [vmem:[%s2639_s1 + $0x288] sm:$0xff] %v1033_v18  ;;  %1753 = vst [vmem:[%s2639_s1 + $0x280] sm:$0xff] %v1027_v19 }
 0x128   :  { %v1045_v20 = vpop.permute.xlu1 %1044  ;;  %v1039_v21 = vpop.permute.xlu0 %1038 }
 0x129   :  { %1759 = vst [vmem:[%s2639_s1 + $0x298] sm:$0xff] %v1045_v20  ;;  %1757 = vst [vmem:[%s2639_s1 + $0x290] sm:$0xff] %v1039_v21 }
 0x12c   :  { %v1057_v22 = vpop.permute.xlu1 %1056  ;;  %v1051_v23 = vpop.permute.xlu0 %1050 }
 0x12d   :  { %1763 = vst [vmem:[%s2639_s1 + $0x2a8] sm:$0xff] %v1057_v22  ;;  %1761 = vst [vmem:[%s2639_s1 + $0x2a0] sm:$0xff] %v1051_v23 }
 0x130   :  { %v1069_v24 = vpop.permute.xlu1 %1068  ;;  %v1063_v25 = vpop.permute.xlu0 %1062 }
 0x131   :  { %1767 = vst [vmem:[%s2639_s1 + $0x2b8] sm:$0xff] %v1069_v24  ;;  %1765 = vst [vmem:[%s2639_s1 + $0x2b0] sm:$0xff] %v1063_v25 }
 0x134   :  { %v1081_v26 = vpop.permute.xlu1 %1080  ;;  %v1075_v27 = vpop.permute.xlu0 %1074 }
 0x135   :  { %1771 = vst [vmem:[%s2639_s1 + $0x2c8] sm:$0xff] %v1081_v26  ;;  %1769 = vst [vmem:[%s2639_s1 + $0x2c0] sm:$0xff] %v1075_v27 }
 0x138   :  { %v1093_v28 = vpop.permute.xlu1 %1092  ;;  %v1087_v29 = vpop.permute.xlu0 %1086 }
 0x139   :  { %1775 = vst [vmem:[%s2639_s1 + $0x2d8] sm:$0xff] %v1093_v28  ;;  %1773 = vst [vmem:[%s2639_s1 + $0x2d0] sm:$0xff] %v1087_v29 }
 0x13c   :  { %v1105_v30 = vpop.permute.xlu1 %1104  ;;  %v1099_v31 = vpop.permute.xlu0 %1098 }
 0x13d   :  { %1779 = vst [vmem:[%s2639_s1 + $0x2e8] sm:$0xff] %v1105_v30  ;;  %1777 = vst [vmem:[%s2639_s1 + $0x2e0] sm:$0xff] %v1099_v31 }
 0x140   :  { %v1117_v32 = vpop.permute.xlu1 %1116  ;;  %v1111_v33 = vpop.permute.xlu0 %1110 }
 0x141   :  { %1783 = vst [vmem:[%s2639_s1 + $0x2f8] sm:$0xff] %v1117_v32  ;;  %1781 = vst [vmem:[%s2639_s1 + $0x2f0] sm:$0xff] %v1111_v33 }
 0x144   :  { %v1129_v34 = vpop.permute.xlu1 %1128  ;;  %v1123_v35 = vpop.permute.xlu0 %1122 }
 0x145   :  { %1787 = vst [vmem:[%s2639_s1 + $0x308] sm:$0xff] %v1129_v34  ;;  %1785 = vst [vmem:[%s2639_s1 + $0x300] sm:$0xff] %v1123_v35 }
 0x148   :  { %v1141_v36 = vpop.permute.xlu1 %1140  ;;  %v1135_v37 = vpop.permute.xlu0 %1134 }
 0x149   :  { %1791 = vst [vmem:[%s2639_s1 + $0x318] sm:$0xff] %v1141_v36  ;;  %1789 = vst [vmem:[%s2639_s1 + $0x310] sm:$0xff] %v1135_v37 }
 0x14c   :  { %v1153_v38 = vpop.permute.xlu1 %1152  ;;  %v1147_v39 = vpop.permute.xlu0 %1146 }
 0x14d   :  { %1795 = vst [vmem:[%s2639_s1 + $0x328] sm:$0xff] %v1153_v38  ;;  %1793 = vst [vmem:[%s2639_s1 + $0x320] sm:$0xff] %v1147_v39 }
 0x150   :  { %v1165_v40 = vpop.permute.xlu1 %1164  ;;  %v1159_v41 = vpop.permute.xlu0 %1158 }
 0x151   :  { %1799 = vst [vmem:[%s2639_s1 + $0x338] sm:$0xff] %v1165_v40  ;;  %1797 = vst [vmem:[%s2639_s1 + $0x330] sm:$0xff] %v1159_v41 }
 0x154   :  { %v1177_v42 = vpop.permute.xlu1 %1176  ;;  %v1171_v43 = vpop.permute.xlu0 %1170 }
 0x155   :  { %1803 = vst [vmem:[%s2639_s1 + $0x348] sm:$0xff] %v1177_v42  ;;  %1801 = vst [vmem:[%s2639_s1 + $0x340] sm:$0xff] %v1171_v43 }
 0x158   :  { %v1189_v44 = vpop.permute.xlu1 %1188  ;;  %v1183_v45 = vpop.permute.xlu0 %1182 }
 0x159   :  { %1807 = vst [vmem:[%s2639_s1 + $0x358] sm:$0xff] %v1189_v44  ;;  %1805 = vst [vmem:[%s2639_s1 + $0x350] sm:$0xff] %v1183_v45 }
 0x15c   :  { %v1201_v46 = vpop.permute.xlu1 %1200  ;;  %v1195_v47 = vpop.permute.xlu0 %1194 }
 0x15d   :  { %1811 = vst [vmem:[%s2639_s1 + $0x368] sm:$0xff] %v1201_v46  ;;  %1809 = vst [vmem:[%s2639_s1 + $0x360] sm:$0xff] %v1195_v47 }
 0x160   :  { %v1213_v48 = vpop.permute.xlu1 %1212  ;;  %v1207_v49 = vpop.permute.xlu0 %1206 }
 0x161   :  { %1815 = vst [vmem:[%s2639_s1 + $0x378] sm:$0xff] %v1213_v48  ;;  %1813 = vst [vmem:[%s2639_s1 + $0x370] sm:$0xff] %v1207_v49 }
 0x164   :  { %v1225_v50 = vpop.permute.xlu1 %1224  ;;  %v1219_v51 = vpop.permute.xlu0 %1218 }
 0x165   :  { %1819 = vst [vmem:[%s2639_s1 + $0x388] sm:$0xff] %v1225_v50  ;;  %1817 = vst [vmem:[%s2639_s1 + $0x380] sm:$0xff] %v1219_v51 }
 0x168   :  { %v1237_v52 = vpop.permute.xlu1 %1236  ;;  %v1231_v53 = vpop.permute.xlu0 %1230 }
 0x169   :  { %1823 = vst [vmem:[%s2639_s1 + $0x398] sm:$0xff] %v1237_v52  ;;  %1821 = vst [vmem:[%s2639_s1 + $0x390] sm:$0xff] %v1231_v53 }
 0x16c   :  { %v1249_v54 = vpop.permute.xlu1 %1248  ;;  %v1243_v55 = vpop.permute.xlu0 %1242 }
 0x16d   :  { %1827 = vst [vmem:[%s2639_s1 + $0x3a8] sm:$0xff] %v1249_v54  ;;  %1825 = vst [vmem:[%s2639_s1 + $0x3a0] sm:$0xff] %v1243_v55 }
 0x170   :  { %v1261_v56 = vpop.permute.xlu1 %1260  ;;  %v1255_v57 = vpop.permute.xlu0 %1254 }
 0x171   :  { %1831 = vst [vmem:[%s2639_s1 + $0x3b8] sm:$0xff] %v1261_v56  ;;  %1829 = vst [vmem:[%s2639_s1 + $0x3b0] sm:$0xff] %v1255_v57 }
 0x174   :  { %v1273_v58 = vpop.permute.xlu1 %1272  ;;  %v1267_v59 = vpop.permute.xlu0 %1266 }
 0x175   :  { %1835 = vst [vmem:[%s2639_s1 + $0x3c8] sm:$0xff] %v1273_v58  ;;  %1833 = vst [vmem:[%s2639_s1 + $0x3c0] sm:$0xff] %v1267_v59 }
 0x178   :  { %v1285_v60 = vpop.permute.xlu1 %1284  ;;  %v1279_v61 = vpop.permute.xlu0 %1278 }
 0x179   :  { %1839 = vst [vmem:[%s2639_s1 + $0x3d8] sm:$0xff] %v1285_v60  ;;  %1837 = vst [vmem:[%s2639_s1 + $0x3d0] sm:$0xff] %v1279_v61 }
 0x17c   :  { %v1297_v62 = vpop.permute.xlu1 %1296  ;;  %v1291_v63 = vpop.permute.xlu0 %1290 }
 0x17d   :  { %1843 = vst [vmem:[%s2639_s1 + $0x3e8] sm:$0xff] %v1297_v62  ;;  %1841 = vst [vmem:[%s2639_s1 + $0x3e0] sm:$0xff] %v1291_v63 }
 0x180   :  { %v1309_v0 = vpop.permute.xlu1 %1308  ;;  %v1303_v1 = vpop.permute.xlu0 %1302 }
 0x181   :  { %1847 = vst [vmem:[%s2639_s1 + $0x3f8] sm:$0xff] %v1309_v0  ;;  %1845 = vst [vmem:[%s2639_s1 + $0x3f0] sm:$0xff] %v1303_v1 }

// kernel: factorized_fno3d_forward.8
= control target key start
LH: loop header
LB: loop body
LE: loop exit
PB: predicated region body
PF: predicated region fallthrough
CT: control target
= control target key end

     0   :  { %s694_s15 = smov 0   ;;  %s696_s16 = smov 0   ;;  %s762_s0 = inlined_call_operand.vmem [shape: bf16[2,8,1152], index: 0, kind: input, shape index: {}]   ;;  %s763_s1 = inlined_call_operand.vmem [shape: bf16[8,8], index: 1, kind: input, shape index: {}]   ;;  %s764_s2 = inlined_call_operand.vmem [shape: f32[8,1], index: 2, kind: input, shape index: {}]   ;;  %s765_s3 = inlined_call_operand.vmem [shape: bf16[2,8,1152], index: 3, kind: input, shape index: {}]   ;;  %s766_s4 = inlined_call_operand.vmem [shape: bf16[2,8,1152], index: 4, kind: output, shape index: {}]  }
   0x1   :  { %s698_s17 = smov 0   ;;  %s700_s18 = smov 0  }
   0x2   :  { %s702_s19 = smov 0  }
   0x3 LB: > { %s23_s20 = sadd.s32 1, %s656_s17  ;;  %s26_s21 = sadd.s32 1, %s660_s18  ;;  %s664_s19 = sphi %s702_s19, %s14_s19   ;;  %s660_s18 = sphi %s700_s18, %s770_s18   ;;  %s656_s17 = sphi %s698_s17, %s769_s17   ;;  %s652_s16 = sphi %s696_s16, %s768_s16   ;;  %s648_s15 = sphi %s694_s15, %s767_s15  }
   0x4   : > { %p24_p0 = scmp.ge.s32.totalorder %s23_s20, 3  ;;  %p548_p1 = scmp.ge.s32.totalorder %s664_s19, 1 }
   0x5   : > { %p200_p2 = scmp.lt.s32.totalorder %s664_s19, 7 }
   0x6   : > { %s772_s20 = smov (%p24_p0, %s23_s20), 0  ;;  %s774_s21 = smov (!%p24_p0, %s26_s21), %s660_s18 }
   0x7   : > { %p201_p3 = pnand %p548_p1, %p200_p2  ;;  %p28_p4 = scmp.ge.s32.totalorder %s774_s21, 2 }
   0x8   : > { %s243_s22 = smul.u32 (!%p201_p3), 3, %s648_s15  ;;  %p244_p5 = scmp.lt.s32.totalorder (!%p201_p3), %s652_s16, 1  ;;  %v666_v0 = vmov (!%p201_p3), 0.0   ;;  %v667_v1 = vmov (!%p201_p3), 0   ;;  %v277_v2 = vld [vmem:[%s764_s2] sm:$0xff] (!%p201_p3)  ;;  %vm668_vm0 = vmmov (!%p201_p3), 0  }
   0x9   : > { %s776_s21 = smov (%p28_p4, %s774_s21), 0  ;;  %204 = sbr.rel (%p201_p3) target bundleno = 274 (0x112), region = 36 }
   0xa   : > { %566 = vmatprep.subr.bf16.mxu1 (!%p201_p3), %v666_v0  ;;  %337 = vmatprep.mubr.bf16.mxu0 (!%p201_p3), %v667_v1  ;;  %p246_p6 = scmp.lt.s32.totalorder (!%p201_p3), %s243_s22, 8  ;;  %vm295_vm1 = vcmask (!%p201_p3), 1043456   ;;  %v274_v9 = vld [vmem:[%s763_s1] sm:$0xf] (!%p201_p3)  ;;  %vm291_vm2 = vcmask (!%p201_p3), 64512  }
   0xb   : > { %568 = vmatprep.mubr.msk.bf16.mxu1 (!%p201_p3), %vm668_vm0, %v666_v0  ;;  %616 = vset.pattern.permute.xlu0 (!%p201_p3), %v667_v1 }
   0xc   : > { %280 = vperm.xlu0 (!%p201_p3), %616, %v277_v2  }
  0x10   : > { %s778_s16 = smov (!%p244_p5, %s652_s16), 1  ;;  %s780_s22 = smov (!%p246_p6, %s243_s22), 8 }
  0x11   : > { %s572_s25 = smul.u32 9, %s778_s16 }
  0x13   : > { %s249_s26 = sadd.s32 %s572_s25, %s780_s22 }
  0x14   : > { %s730_s27 = sshll.u32 %s249_s26, 2 }
  0x15   : > { %s251_s30 = scalar_lea.vmem %s762_s0, %s730_s27  ;;  %s261_s9 = scalar_lea.vmem %s765_s3, %s730_s27 }
  0x16   : > { %v275_v3 = vld [vmem:[%s251_s30] sm:$0xff]  ;;  %v619_v4 = vld [vmem:[%s251_s30 + $0x8] ss:$0 sps:$4 sm:$0xff]   ;;  %s271_s12 = scalar_lea.vmem %s766_s4, %s730_s27 }
  0x17   : > { %v553_v5 = vcombine.high %v275_v3, %v275_v3  ;;  %v552_v6 = vcombine.low %v275_v3, %v275_v3  ;;  %v303_v7 = vsel %vm295_vm1, %v619_v4, 0  ;;  %v387_v10 = vld [vmem:[%s261_s9 + $0x8] sm:$0xf]  ;;  %v386_v11 = vld [vmem:[%s261_s9] sm:$0xff] }
  0x18   : > { %567 = vmatpush3.bf16.msra.mxu1 %v303_v7  ;;  %v390_v13 = vunpack.c.l.bf16 %v387_v10  ;;  %v388_v14 = vunpack.c.l.bf16 %v386_v11  ;;  %v389_v18 = vunpack.c.h.bf16 %v386_v11 }
  0x19   : > { %555 = vmatprep.subr.msk.bf16.mxu0 %vm295_vm1, %v553_v5  ;;  %v297_v8 = vsel %vm295_vm1, %v552_v6, 0 }
  0x1a   : > { %306 = vmatpush1.bf16.msra.mxu0 %v297_v8 }
  0x1b   : > { %569 = vmatmul.mubr.msk.bf16.vlgmr.msra.gmra.mrb[0].mxu1 %vm291_vm2, %v274_v9 }
  0x1d   : > { %556 = vmatmul.mubr.msk.bf16.vlgmr.msra.gmra.mrb[0].mxu0 %vm291_vm2, %v274_v9 }
  0x8b   : > { %v281_v12 = vpop.permute.xlu0 %280 }
  0xee   : > { %v380_v15 = vpop.f32.mrb[0].mxu1 }
  0xef   : > { %v381_v17 = vadd.f32 %v380_v15, %v281_v12  ;;  %v570_v19 = vpop.f32.mrb[1].mxu1 }
  0xf0   : > { %v339_v16 = vpop.f32.mrb[0].mxu0  ;;  %v383_v22 = vpop.f32.mrb[2].mxu1 }
  0xf1   : > { %v340_v20 = vadd.f32 %v339_v16, %v281_v12  ;;  %v341_v21 = vpop.f32.mrb[1].mxu0  ;;  %v393_v23 = vadd.f32 %v390_v13, %v381_v17  ;;  %v571_v26 = vpop.f32.mrb[3].mxu1 }
  0xf2   : > { %v342_v24 = vadd.f32 %v341_v21, %v281_v12  ;;  %v343_v25 = vpop.f32.mrb[2].mxu0 }
  0xf3   : > { %v391_v27 = vadd.f32 %v388_v14, %v340_v20  ;;  %v344_v28 = vpop.f32.mrb[3].mxu0  ;;  %v399_v29 = vmul.f32 0.044715, %v393_v23  ;;  %v396_v47 = vmul.f32 0.5, %v393_v23 }
  0xf4   : > { %v392_v30 = vadd.f32 %v389_v18, %v342_v24 }
  0xf5   : > { %v397_v31 = vmul.f32 0.044715, %v391_v27  ;;  %v402_v32 = vmul.f32 %v399_v29, %v393_v23  ;;  %v394_v50 = vmul.f32 0.5, %v391_v27 }
  0xf6   : > { %v398_v33 = vmul.f32 0.044715, %v392_v30  ;;  %v395_v53 = vmul.f32 0.5, %v392_v30 }
  0xf7   : > { %v400_v34 = vmul.f32 %v397_v31, %v391_v27  ;;  %v405_v35 = vmul.f32 %v402_v32, %v393_v23 }
  0xf8   : > { %v401_v36 = vmul.f32 %v398_v33, %v392_v30 }
  0xf9   : > { %v403_v37 = vmul.f32 %v400_v34, %v391_v27  ;;  %v408_v38 = vadd.f32 %v405_v35, %v393_v23 }
  0xfa   : > { %v404_v39 = vmul.f32 %v401_v36, %v392_v30 }
  0xfb   : > { %v406_v40 = vadd.f32 %v403_v37, %v391_v27  ;;  %v411_v41 = vmul.f32 0.7978846, %v408_v38 }
  0xfc   : > { %v407_v42 = vadd.f32 %v404_v39, %v392_v30 }
  0xfd   : > { %v409_v43 = vmul.f32 0.7978846, %v406_v40  ;;  %620 = vtanh.f32 %v411_v41 }
  0xfe   : > { %v410_v44 = vmul.f32 0.7978846, %v407_v42 }
  0xff   : > { %622 = vtanh.f32 %v409_v43 }
 0x100   : > { %624 = vtanh.f32 %v410_v44 }
 0x107   : > { %v621_v45 = vpop.eup %620 }
 0x108   : > { %v417_v48 = vadd.f32 1.0, %v621_v45 }
 0x109   : > { %v623_v46 = vpop.eup %622 }
 0x10a   : > { %v625_v49 = vpop.eup %624  ;;  %v415_v51 = vadd.f32 1.0, %v623_v46  ;;  %v420_v52 = vmul.f32 %v417_v48, %v396_v47 }
 0x10b   : > { %v416_v54 = vadd.f32 1.0, %v625_v49 }
 0x10c   : > { %v418_v55 = vmul.f32 %v415_v51, %v394_v50  ;;  %v563_v56 = vpack.c.bf16 %v420_v52, %v420_v52 }
 0x10d   : > { %v419_v57 = vmul.f32 %v416_v54, %v395_v53 }
 0x10e   : > { %435 = vst [vmem:[%s271_s12 + $0x8] sm:$0xf] %v563_v56 }
 0x10f   : > { %v562_v58 = vpack.c.bf16 %v419_v57, %v418_v55 }
 0x111   : > { %434 = vst [vmem:[%s271_s12] sm:$0xff] %v562_v58 }
 0x112 PF: > { %s14_s19 = sadd.s32 1, %s664_s19   ;;  %s767_s15 = smov %s656_s17 }
 0x113   : > { %p11_p7 = scmp.ge.s32.totalorder %s14_s19, 8   ;;  %s768_s16 = smov %s660_s18 }
 0x114   : > { %s769_s17 = smov %s772_s20  ;;  %s770_s18 = smov %s776_s21 }
 0x115   :  { %13 = sbr.rel (!%p11_p7) target bundleno = 3 (0x3), region = 69 }

// kernel: factorized_fno3d_forward.10
= control target key start
LH: loop header
LB: loop body
LE: loop exit
PB: predicated region body
PF: predicated region fallthrough
CT: control target
= control target key end

     0   :  { %s661_s15 = smov 0   ;;  %s663_s16 = smov 0   ;;  %s729_s0 = inlined_call_operand.vmem [shape: bf16[2,8,1152], index: 0, kind: input, shape index: {}]   ;;  %s730_s1 = inlined_call_operand.vmem [shape: bf16[8,8], index: 1, kind: input, shape index: {}]   ;;  %s731_s2 = inlined_call_operand.vmem [shape: f32[8,1], index: 2, kind: input, shape index: {}]   ;;  %s732_s3 = inlined_call_operand.vmem [shape: bf16[2,8,1152], index: 3, kind: input, shape index: {}]   ;;  %s733_s4 = inlined_call_operand.vmem [shape: bf16[2,8,1152], index: 4, kind: output, shape index: {}]  }
   0x1   :  { %s665_s17 = smov 0   ;;  %s667_s18 = smov 0  }
   0x2   :  { %s669_s19 = smov 0  }
   0x3 LB: > { %s23_s20 = sadd.s32 1, %s623_s17  ;;  %s26_s21 = sadd.s32 1, %s627_s18  ;;  %s631_s19 = sphi %s669_s19, %s14_s19   ;;  %s627_s18 = sphi %s667_s18, %s737_s18   ;;  %s623_s17 = sphi %s665_s17, %s736_s17   ;;  %s619_s16 = sphi %s663_s16, %s735_s16   ;;  %s615_s15 = sphi %s661_s15, %s734_s15  }
   0x4   : > { %p24_p0 = scmp.ge.s32.totalorder %s23_s20, 3  ;;  %p521_p1 = scmp.ge.s32.totalorder %s631_s19, 1 }
   0x5   : > { %p200_p2 = scmp.lt.s32.totalorder %s631_s19, 7 }
   0x6   : > { %s739_s20 = smov (%p24_p0, %s23_s20), 0  ;;  %s741_s21 = smov (!%p24_p0, %s26_s21), %s627_s18 }
   0x7   : > { %p201_p3 = pnand %p521_p1, %p200_p2  ;;  %p28_p4 = scmp.ge.s32.totalorder %s741_s21, 2 }
   0x8   : > { %s243_s22 = smul.u32 (!%p201_p3), 3, %s615_s15  ;;  %p244_p5 = scmp.lt.s32.totalorder (!%p201_p3), %s619_s16, 1  ;;  %v633_v0 = vmov (!%p201_p3), 0.0   ;;  %v634_v1 = vmov (!%p201_p3), 0   ;;  %v277_v2 = vld [vmem:[%s731_s2] sm:$0xff] (!%p201_p3)  ;;  %vm635_vm0 = vmmov (!%p201_p3), 0  }
   0x9   : > { %s743_s21 = smov (%p28_p4, %s741_s21), 0  ;;  %204 = sbr.rel (%p201_p3) target bundleno = 249 (0xf9), region = 36 }
   0xa   : > { %539 = vmatprep.subr.bf16.mxu1 (!%p201_p3), %v633_v0  ;;  %337 = vmatprep.mubr.bf16.mxu0 (!%p201_p3), %v634_v1  ;;  %p246_p6 = scmp.lt.s32.totalorder (!%p201_p3), %s243_s22, 8  ;;  %vm295_vm1 = vcmask (!%p201_p3), 1043456   ;;  %v274_v9 = vld [vmem:[%s730_s1] sm:$0xf] (!%p201_p3)  ;;  %vm291_vm2 = vcmask (!%p201_p3), 64512  }
   0xb   : > { %541 = vmatprep.mubr.msk.bf16.mxu1 (!%p201_p3), %vm635_vm0, %v633_v0  ;;  %589 = vset.pattern.permute.xlu0 (!%p201_p3), %v634_v1 }
   0xc   : > { %280 = vperm.xlu0 (!%p201_p3), %589, %v277_v2  }
  0x10   : > { %s745_s16 = smov (!%p244_p5, %s619_s16), 1  ;;  %s747_s22 = smov (!%p246_p6, %s243_s22), 8 }
  0x11   : > { %s545_s25 = smul.u32 9, %s745_s16 }
  0x13   : > { %s249_s26 = sadd.s32 %s545_s25, %s747_s22 }
  0x14   : > { %s697_s27 = sshll.u32 %s249_s26, 2 }
  0x15   : > { %s251_s30 = scalar_lea.vmem %s729_s0, %s697_s27  ;;  %s261_s9 = scalar_lea.vmem %s732_s3, %s697_s27 }
  0x16   : > { %v275_v3 = vld [vmem:[%s251_s30] sm:$0xff]  ;;  %v592_v4 = vld [vmem:[%s251_s30 + $0x8] ss:$0 sps:$4 sm:$0xff]   ;;  %s271_s12 = scalar_lea.vmem %s733_s4, %s697_s27 }
  0x17   : > { %v526_v5 = vcombine.high %v275_v3, %v275_v3  ;;  %v525_v6 = vcombine.low %v275_v3, %v275_v3  ;;  %v303_v7 = vsel %vm295_vm1, %v592_v4, 0  ;;  %v387_v10 = vld [vmem:[%s261_s9 + $0x8] sm:$0xf]  ;;  %v386_v11 = vld [vmem:[%s261_s9] sm:$0xff] }
  0x18   : > { %540 = vmatpush3.bf16.msra.mxu1 %v303_v7  ;;  %v390_v13 = vunpack.c.l.bf16 %v387_v10  ;;  %v388_v14 = vunpack.c.l.bf16 %v386_v11  ;;  %v389_v18 = vunpack.c.h.bf16 %v386_v11 }
  0x19   : > { %528 = vmatprep.subr.msk.bf16.mxu0 %vm295_vm1, %v526_v5  ;;  %v297_v8 = vsel %vm295_vm1, %v525_v6, 0 }
  0x1a   : > { %306 = vmatpush1.bf16.msra.mxu0 %v297_v8 }
  0x1b   : > { %542 = vmatmul.mubr.msk.bf16.vlgmr.msra.gmra.mrb[0].mxu1 %vm291_vm2, %v274_v9 }
  0x1d   : > { %529 = vmatmul.mubr.msk.bf16.vlgmr.msra.gmra.mrb[0].mxu0 %vm291_vm2, %v274_v9 }
  0x8b   : > { %v281_v12 = vpop.permute.xlu0 %280 }
  0xee   : > { %v380_v15 = vpop.f32.mrb[0].mxu1 }
  0xef   : > { %v381_v17 = vadd.f32 %v380_v15, %v281_v12  ;;  %v543_v19 = vpop.f32.mrb[1].mxu1 }
  0xf0   : > { %v339_v16 = vpop.f32.mrb[0].mxu0  ;;  %v383_v22 = vpop.f32.mrb[2].mxu1 }
  0xf1   : > { %v340_v20 = vadd.f32 %v339_v16, %v281_v12  ;;  %v341_v21 = vpop.f32.mrb[1].mxu0  ;;  %v393_v23 = vadd.f32 %v390_v13, %v381_v17  ;;  %v544_v26 = vpop.f32.mrb[3].mxu1 }
  0xf2   : > { %v342_v24 = vadd.f32 %v341_v21, %v281_v12  ;;  %v343_v25 = vpop.f32.mrb[2].mxu0 }
  0xf3   : > { %v391_v27 = vadd.f32 %v388_v14, %v340_v20  ;;  %v344_v28 = vpop.f32.mrb[3].mxu0  ;;  %v536_v29 = vpack.c.bf16 %v393_v23, %v393_v23 }
  0xf4   : > { %v392_v30 = vadd.f32 %v389_v18, %v342_v24 }
  0xf5   : > { %408 = vst [vmem:[%s271_s12 + $0x8] sm:$0xf] %v536_v29 }
  0xf6   : > { %v535_v31 = vpack.c.bf16 %v392_v30, %v391_v27 }
  0xf8   : > { %407 = vst [vmem:[%s271_s12] sm:$0xff] %v535_v31 }
  0xf9 PF: > { %s14_s19 = sadd.s32 1, %s631_s19   ;;  %s734_s15 = smov %s623_s17 }
  0xfa   : > { %p11_p7 = scmp.ge.s32.totalorder %s14_s19, 8   ;;  %s735_s16 = smov %s627_s18 }
  0xfb   : > { %s736_s17 = smov %s739_s20  ;;  %s737_s18 = smov %s743_s21 }
  0xfc   :  { %13 = sbr.rel (!%p11_p7) target bundleno = 3 (0x3), region = 69 }

// kernel: factorized_fno3d_forward.11
= control target key start
LH: loop header
LB: loop body
LE: loop exit
PB: predicated region body
PF: predicated region fallthrough
CT: control target
= control target key end

     0   :  { %s774_s20 = smov 0   ;;  %s776_s21 = smov 0   ;;  %s892_s0 = inlined_call_operand.vmem [shape: bf16[2,8,512], index: 0, kind: input, shape index: {}]   ;;  %s893_s1 = inlined_call_operand.vmem [shape: bf16[32,8], index: 1, kind: input, shape index: {}]   ;;  %s894_s2 = inlined_call_operand.vmem [shape: f32[32,1], index: 2, kind: input, shape index: {}]   ;;  %s895_s3 = inlined_call_operand.vmem [shape: bf16[1,32], index: 3, kind: input, shape index: {}]   ;;  %s896_s4 = inlined_call_operand.<no memory space> [shape: f32[1,1], index: 4, kind: input, shape index: {}]   ;;  %s897_s5 = inlined_call_operand.vmem [shape: f32[2,1,512], index: 5, kind: output, shape index: {}]  }
   0x1   :  { %v10_v0 = vstv %s896_s4  ;;  %s778_s22 = smov 0   ;;  %s780_s23 = smov 0  }
   0x2   :  { %11 = vst [vmem:[#allocation2] sm:$0x1] %v10_v0  ;;  %s782_s24 = smov 0  }
   0x3 LB: > { %s26_s4 = sadd.s32 1, %s729_s22  ;;  %s29_s25 = sadd.s32 1, %s733_s23  ;;  %s737_s24 = sphi %s782_s24, %s17_s24   ;;  %s733_s23 = sphi %s780_s23, %s901_s23   ;;  %s729_s22 = sphi %s778_s22, %s900_s22   ;;  %s725_s21 = sphi %s776_s21, %s899_s21   ;;  %s721_s20 = sphi %s774_s20, %s898_s20  }
   0x4   : > { %p27_p0 = scmp.ge.s32.totalorder %s26_s4, 2  ;;  %p619_p1 = scmp.ge.s32.totalorder %s737_s24, 1 }
   0x5   : > { %p210_p2 = scmp.lt.s32.totalorder %s737_s24, 5 }
   0x6   : > { %s903_s4 = smov (%p27_p0, %s26_s4), 0  ;;  %s905_s25 = smov (!%p27_p0, %s29_s25), %s733_s23 }
   0x7   : > { %p211_p3 = pnand %p619_p1, %p210_p2  ;;  %p31_p4 = scmp.ge.s32.totalorder %s905_s25, 2 }
   0x8   : > { %s620_s26 = sshll.u32 (!%p211_p3), %s721_s20, 1  ;;  %p246_p5 = scmp.lt.s32.totalorder (!%p211_p3), %s725_s21, 1  ;;  %v739_v1 = vmov (!%p211_p3), 0   ;;  %v270_v2 = vld [vmem:[%s894_s2] sm:$0xff] (!%p211_p3)  ;;  %v272_v3 = vld [vmem:[%s894_s2 + $0x10] sm:$0xff] (!%p211_p3)  ;;  %v271_v4 = vld [vmem:[%s894_s2 + $0x8] sm:$0xff] (!%p211_p3) }
   0x9   : > { %s907_s25 = smov (%p31_p4, %s905_s25), 0  ;;  %214 = sbr.rel (%p211_p3) target bundleno = 506 (0x1fa), region = 40 }
   0xa   : > { %p248_p6 = scmp.lt.s32.totalorder (!%p211_p3), %s620_s26, 3  ;;  %355 = vmatprep.mubr.bf16.mxu0 (!%p211_p3), %v739_v1  ;;  %677 = vset.pattern.permute.xlu0 (!%p211_p3), %v739_v1  ;;  %v273_v5 = vld [vmem:[%s894_s2 + $0x18] sm:$0xff] (!%p211_p3)  ;;  %vm316_vm0 = vcmask (!%p211_p3), 1043456   ;;  %v453_v7 = vld [vmem:[#allocation2] sm:$0x1] (!%p211_p3)  ;;  %vm309_vm1 = vcmask (!%p211_p3), 64512  }
   0xb   : > { %678 = vset.pattern.permute.xlu1 (!%p211_p3), %v739_v1  ;;  %499 = vmatprep.mubr.bf16.mxu1 (!%p211_p3), %v739_v1  ;;  %v681_v11 = vld [vmem:[%s893_s1] sm:$0xff] (!%p211_p3)   ;;  %v682_v12 = vld [vmem:[%s893_s1 + $0x8] sm:$0xff] (!%p211_p3)   ;;  %vm463_vm2 = vcmask (!%p211_p3), 261120  }
   0xc   : > { %276 = vperm.xlu0 (!%p211_p3), %677, %v270_v2   ;;  %286 = vperm.xlu1 (!%p211_p3), %678, %v272_v3  }
  0x10   : > { %s909_s21 = smov (!%p246_p5, %s725_s21), 1  ;;  %s911_s26 = smov (!%p248_p6, %s620_s26), 3  ;;  %281 = vperm.xlu0 %677, %v271_v4   ;;  %291 = vperm.xlu1 %678, %v273_v5  }
  0x11   : > { %s621_s6 = sshll.u32 %s909_s21, 2 }
  0x12   : > { %s813_s9 = sadd.s32 %s621_s6, %s911_s26 }
  0x13   : > { %s622_s12 = sshll.u32 %s813_s9, 2  ;;  %s262_s28 = scalar_lea.vmem %s897_s5, %s813_s9 }
  0x14   : > { %s253_s15 = scalar_lea.vmem %s892_s0, %s622_s12  ;;  %456 = vperm.xlu0 %677, %v453_v7  }
  0x15   : > { %v269_v6 = vld [vmem:[%s253_s15] sm:$0xff] }
  0x16   : > { %v628_v8 = vcombine.high %v269_v6, %v269_v6  ;;  %v627_v9 = vcombine.low %v269_v6, %v269_v6 }
  0x18   : > { %629 = vmatprep.subr.msk.bf16.mxu0 %vm316_vm0, %v628_v8  ;;  %v318_v10 = vsel %vm316_vm0, %v627_v9, 0 }
  0x19   : > { %324 = vmatpush1.bf16.msra.mxu0 %v318_v10 }
  0x1c   : > { %630 = vmatmul.mubr.msk.bf16.vlgmr.msra.gmra.mrb[0].mxu0 %vm309_vm1, %v681_v11 }
  0x1d   : > { %365 = vmatprep.mubr.bf16.mxu0 %v739_v1 }
  0x24   : > { %631 = vmatmul.mubr.msk.bf16.gmra.mrb[4].mxu0 %vm309_vm1, %v682_v12 }
  0x8b   : > { %v277_v13 = vpop.permute.xlu0 %276  ;;  %v287_v24 = vpop.permute.xlu1 %286 }
  0x8f   : > { %v282_v17 = vpop.permute.xlu0 %281  ;;  %v292_v39 = vpop.permute.xlu1 %291 }
  0xef   : > { %v357_v14 = vpop.f32.mrb[0].mxu0 }
  0xf0   : > { %v828_v15 = vadd.f32 %v357_v14, %v277_v13  ;;  %v359_v16 = vpop.f32.mrb[1].mxu0 }
  0xf1   : > { %v830_v18 = vadd.f32 %v359_v16, %v277_v13  ;;  %v361_v19 = vpop.f32.mrb[2].mxu0 }
  0xf2   : > { %v384_v20 = vmul.f32 0.044715, %v828_v15  ;;  %v833_v21 = vadd.f32 %v361_v19, %v282_v17  ;;  %v363_v22 = vpop.f32.mrb[3].mxu0  ;;  %v376_v16 = vmul.f32 0.5, %v828_v15 }
  0xf3   : > { %v385_v23 = vmul.f32 0.044715, %v830_v18  ;;  %v836_v25 = vadd.f32 %v363_v22, %v282_v17 }
  0xf4   : > { %v392_v26 = vmul.f32 %v384_v20, %v828_v15  ;;  %v386_v27 = vmul.f32 0.044715, %v833_v21  ;;  %v378_v17 = vmul.f32 0.5, %v833_v21  ;;  %v377_v20 = vmul.f32 0.5, %v830_v18 }
  0xf5   : > { %v387_v28 = vmul.f32 0.044715, %v836_v25  ;;  %v393_v29 = vmul.f32 %v385_v23, %v830_v18  ;;  %v379_v22 = vmul.f32 0.5, %v836_v25 }
  0xf6   : > { %v394_v30 = vmul.f32 %v386_v27, %v833_v21  ;;  %v400_v31 = vmul.f32 %v392_v26, %v828_v15 }
  0xf7   : > { %v367_v32 = vpop.f32.mrb[4].mxu0  ;;  %v395_v33 = vmul.f32 %v387_v28, %v836_v25  ;;  %v401_v34 = vmul.f32 %v393_v29, %v830_v18 }
  0xf8   : > { %v846_v35 = vadd.f32 %v367_v32, %v287_v24  ;;  %v369_v36 = vpop.f32.mrb[5].mxu0  ;;  %v402_v37 = vmul.f32 %v394_v30, %v833_v21  ;;  %v408_v38 = vadd.f32 %v400_v31, %v828_v15 }
  0xf9   : > { %v850_v40 = vadd.f32 %v369_v36, %v287_v24  ;;  %v371_v41 = vpop.f32.mrb[6].mxu0  ;;  %v403_v42 = vmul.f32 %v395_v33, %v836_v25  ;;  %v409_v43 = vadd.f32 %v401_v34, %v830_v18 }
  0xfa   : > { %v388_v44 = vmul.f32 0.044715, %v846_v35  ;;  %v372_v45 = vadd.f32 %v371_v41, %v292_v39  ;;  %v373_v46 = vpop.f32.mrb[7].mxu0  ;;  %v410_v47 = vadd.f32 %v402_v37, %v833_v21  ;;  %v416_v48 = vmul.f32 0.7978846, %v408_v38 }
  0xfb   : > { %v389_v49 = vmul.f32 0.044715, %v850_v40  ;;  %v374_v50 = vadd.f32 %v373_v46, %v292_v39  ;;  %v411_v51 = vadd.f32 %v403_v42, %v836_v25  ;;  %v417_v52 = vmul.f32 0.7978846, %v409_v43 }
  0xfc   : > { %v396_v53 = vmul.f32 %v388_v44, %v846_v35  ;;  %v390_v54 = vmul.f32 0.044715, %v372_v45  ;;  %v418_v55 = vmul.f32 0.7978846, %v410_v47  ;;  %683 = vtanh.f32 %v416_v48  ;;  %v448_v48 = vld [vmem:[%s895_s3] sm:$0x1] }
  0xfd   : > { %v397_v56 = vmul.f32 %v389_v49, %v850_v40  ;;  %v391_v57 = vmul.f32 0.044715, %v374_v50  ;;  %v419_v58 = vmul.f32 0.7978846, %v411_v51  ;;  %685 = vtanh.f32 %v417_v52  ;;  %v457_v51 = vpop.permute.xlu0 %456 }
  0xfe   : > { %v404_v59 = vmul.f32 %v396_v53, %v846_v35  ;;  %v398_v60 = vmul.f32 %v390_v54, %v372_v45  ;;  %687 = vtanh.f32 %v418_v55  ;;  %v380_v21 = vmul.f32 0.5, %v846_v35 }
  0xff   : > { %v405_v61 = vmul.f32 %v397_v56, %v850_v40  ;;  %v399_v62 = vmul.f32 %v391_v57, %v374_v50  ;;  %689 = vtanh.f32 %v419_v58  ;;  %v382_v18 = vmul.f32 0.5, %v372_v45 }
 0x100   : > { %v406_v63 = vmul.f32 %v398_v60, %v372_v45  ;;  %v412_v0 = vadd.f32 %v404_v59, %v846_v35  ;;  %v381_v25 = vmul.f32 0.5, %v850_v40  ;;  %v383_v38 = vmul.f32 0.5, %v374_v50 }
 0x101   : > { %v407_v1 = vmul.f32 %v399_v62, %v374_v50  ;;  %v413_v2 = vadd.f32 %v405_v61, %v850_v40  ;;  %v459_v35 = vlaneseq  ;;  %v740_v40 = vmov 1966171168  }
 0x102   : > { %v414_v3 = vadd.f32 %v406_v63, %v372_v45  ;;  %v420_v4 = vmul.f32 0.7978846, %v412_v0  ;;  %v512_v49 = vunpack.c.l.s4 %v740_v40 }
 0x103   : > { %v415_v5 = vadd.f32 %v407_v1, %v374_v50  ;;  %v421_v6 = vmul.f32 0.7978846, %v413_v2  ;;  %v460_v45 = vshrl.u32 %v459_v35, 7  ;;  %vm528_vm3 = vcmp.lt.s32.totalorder %v459_v35, 256 }
 0x104   : > { %v422_v7 = vmul.f32 0.7978846, %v414_v3  ;;  %691 = vtanh.f32 %v420_v4  ;;  %v513_v52 = vunpack.c.0.s8 %v512_v49 }
 0x105   : > { %v423_v8 = vmul.f32 0.7978846, %v415_v5  ;;  %693 = vtanh.f32 %v421_v6  ;;  %v461_v50 = vsub.s32 0, %v460_v45 }
 0x106   : > { %v684_v9 = vpop.eup %683  ;;  %695 = vtanh.f32 %v422_v7  ;;  %v516_v58 = vsub.s32 %v513_v52, %v460_v45 }
 0x107   : > { %v686_v10 = vpop.eup %685  ;;  %v432_v11 = vadd.f32 1.0, %v684_v9  ;;  %697 = vtanh.f32 %v423_v8  ;;  %v462_v53 = vrot.slane %v457_v51, %v461_v50 }
 0x108   : > { %v688_v12 = vpop.eup %687  ;;  %v433_v13 = vadd.f32 1.0, %v686_v10 }
 0x109   : > { %v690_v14 = vpop.eup %689  ;;  %v434_v19 = vadd.f32 1.0, %v688_v12  ;;  %v440_v24 = vmul.f32 %v432_v11, %v376_v16 }
 0x10a   : > { %v435_v23 = vadd.f32 1.0, %v690_v14  ;;  %v441_v27 = vmul.f32 %v433_v13, %v377_v20 }
 0x10b   : > { %v442_v26 = vmul.f32 %v434_v19, %v378_v17 }
 0x10c   : > { %v443_v28 = vmul.f32 %v435_v23, %v379_v22 }
 0x10d   : > { %v449_v29 = vpack.c.bf16 %v442_v26, %v440_v24 }
 0x10e   : > { %v692_v30 = vpop.eup %691  ;;  %v450_v31 = vpack.c.bf16 %v443_v28, %v441_v27 }
 0x10f   : > { %v694_v32 = vpop.eup %693  ;;  %v436_v33 = vadd.f32 1.0, %v692_v30 }
 0x110   : > { %v696_v34 = vpop.eup %695  ;;  %467 = vmatprep.subr.bf16.mxu1 %v450_v31  ;;  %v437_v15 = vadd.f32 1.0, %v694_v32 }
 0x111   : > { %v698_v36 = vpop.eup %697  ;;  %468 = vmatpush1.bf16.msra.mxu1 %v449_v29  ;;  %v438_v37 = vadd.f32 1.0, %v696_v34  ;;  %v444_v41 = vmul.f32 %v436_v33, %v380_v21 }
 0x112   : > { %v439_v39 = vadd.f32 1.0, %v698_v36  ;;  %v445_v43 = vmul.f32 %v437_v15, %v381_v25 }
 0x113   : > { %v446_v42 = vmul.f32 %v438_v37, %v382_v18 }
 0x114   : > { %v447_v44 = vmul.f32 %v439_v39, %v383_v38 }
 0x115   : > { %v451_v46 = vpack.c.bf16 %v446_v42, %v444_v41 }
 0x116   : > { %v452_v47 = vpack.c.bf16 %v447_v44, %v445_v43 }
 0x118   : > { %469 = vmatprep.subr.bf16.mxu1 %v452_v47 }
 0x119   : > { %470 = vmatpush1.bf16.msra.mxu1 %v451_v46 }
 0x11c   : > { %632 = vmatmul.mubr.msk.bf16.vlgmr.msra.gmra.mrb[0].mxu1 %vm463_vm2, %v448_v48 }
 0x1ef   : > { %v501_v54 = vpop.f32.mrb[0].mxu1 }
 0x1f0   : > { %v502_v55 = vadd.f32 %v501_v54, %v462_v53  ;;  %v503_v56 = vpop.f32.mrb[1].mxu1 }
 0x1f1   : > { %v504_v57 = vadd.f32 %v503_v56, %v462_v53  ;;  %v505_v59 = vpop.f32.mrb[2].mxu1 }
 0x1f2   : > { %v506_v60 = vpop.f32.mrb[3].mxu1 }
 0x1f3   : > { %v510_v61 = vcombine.low %v502_v55, %v504_v57 }
 0x1f5   : > { %v517_v62 = vrot.slane %v510_v61, %v516_v58 }
 0x1f7   : > { %v524_v63 = vrot.slane %v517_v62, %v516_v58 }
 0x1f9   : > { %530 = vst.msk [vmem:[%s262_s28] sm:$0x3] %vm528_vm3, %v524_v63 }
 0x1fa PF: > { %s17_s24 = sadd.s32 1, %s737_s24   ;;  %s898_s20 = smov %s729_s22 }
 0x1fb   : > { %p14_p7 = scmp.ge.s32.totalorder %s17_s24, 6   ;;  %s899_s21 = smov %s733_s23 }
 0x1fc   : > { %s900_s22 = smov %s903_s4  ;;  %s901_s23 = smov %s907_s25 }
 0x1fd   :  { %16 = sbr.rel (!%p14_p7) target bundleno = 3 (0x3), region = 70 }

</bundles_post_ra>
